<compile_context>
chip_gen: v7x
topology: tpu7x:2x2x1
jax: 0.10.0
libtpu: 0.0.40
codegen_flags: <defaults>
</compile_context>

<pallas_src>
import functools

import jax
import jax.numpy as jnp
from jax.experimental import pallas as pl
from jax.experimental.pallas import tpu as pltpu


# ----------------------------------------------------------------------------
# Fused kernel: conv(3x3, as im2col matmul) + bias + ReLU
#               -> per-sample pooled-sum accumulation over spatial chunks
#               -> (last chunk) embedding projection + bias -> L2 normalize
# ----------------------------------------------------------------------------
def fused_embed_kernel(p_ref, wc_ref, bc_ref, we_ref, be_ref, o_ref, acc_ref,
                       *, spt, chunk_hw, inv_hw):
    # p_ref : (spt, chunk_hw, Kp)  bf16   im2col patches (chunk of spatial pos.)
    # wc_ref: (Kp, C)              bf16   conv weight (K zero-padded)
    # bc_ref: (1, C)               f32    conv bias
    # we_ref: (C, E)               bf16   embedding weight
    # be_ref: (1, E)               f32    embedding bias
    # o_ref : (spt, E)             f32    L2-normalized embeddings
    # acc_ref:(spt, C)             f32    pooled-sum accumulator (scratch)
    j = pl.program_id(1)

    @pl.when(j == 0)
    def _():
        acc_ref[...] = jnp.zeros_like(acc_ref)

    kp = p_ref.shape[-1]
    rows = spt * chunk_hw

    # Conv-as-matmul on the MXU (bf16 in, f32 accumulate); bias + ReLU in f32.
    x = p_ref[...].reshape(rows, kp)                                  # bf16
    acti = jnp.dot(x, wc_ref[...], preferred_element_type=jnp.float32)
    acti = jnp.maximum(acti + bc_ref[...], 0.0)                       # (rows, C)

    # Per-sample pooled sum over this spatial chunk: sublane-clean reshape
    # (chunk_hw is a multiple of 8) + cross-sublane reduce.  No pooling matrix.
    acc_ref[...] += jnp.sum(acti.reshape(spt, chunk_hw, -1), axis=1)  # (spt, C)

    @pl.when(j == pl.num_programs(1) - 1)
    def _():
        pooled = (acc_ref[...] * inv_hw).astype(we_ref.dtype)         # (spt, C) bf16
        emb = jnp.dot(pooled, we_ref[...],
                      preferred_element_type=jnp.float32) + be_ref[...]  # (spt, E)
        inv_norm = jax.lax.rsqrt(jnp.sum(emb * emb, axis=-1, keepdims=True) + 1e-12)
        o_ref[...] = emb * inv_norm


def fused_forward_pallas(patches, w_conv, b_conv, w_emb, b_emb, *,
                         num_tiles, spt, hw, chunk_hw):
    s_total, hw_in, kp = patches.shape
    assert s_total == num_tiles * spt and hw_in == hw and hw % chunk_hw == 0
    c = w_conv.shape[1]
    e = w_emb.shape[1]
    num_chunks = hw // chunk_hw

    kernel = functools.partial(fused_embed_kernel, spt=spt, chunk_hw=chunk_hw,
                               inv_hw=1.0 / hw)
    out = pl.pallas_call(
        kernel,
        out_shape=jax.ShapeDtypeStruct((num_tiles * spt, e), jnp.float32),
        grid_spec=pltpu.PrefetchScalarGridSpec(
            num_scalar_prefetch=0,
            grid=(num_tiles, num_chunks),
            in_specs=[
                pl.BlockSpec((spt, chunk_hw, kp), lambda i, j: (i, j, 0)),
                pl.BlockSpec((kp, c), lambda i, j: (0, 0)),
                pl.BlockSpec((1, c), lambda i, j: (0, 0)),
                pl.BlockSpec((c, e), lambda i, j: (0, 0)),
                pl.BlockSpec((1, e), lambda i, j: (0, 0)),
            ],
            out_specs=pl.BlockSpec((spt, e), lambda i, j: (i, 0)),
            scratch_shapes=[pltpu.VMEM((spt, c), jnp.float32)],
        ),
        compiler_params=pltpu.CompilerParams(
            dimension_semantics=("parallel", "arbitrary"),
            vmem_limit_bytes=32 * 1024 * 1024,
        ),
    )(patches, w_conv, b_conv, w_emb, b_emb)
    return out


# ----------------------------------------------------------------------------
# Glue: im2col patch extraction (plain JAX, bf16 staged)
# ----------------------------------------------------------------------------
def im2col_3x3(x_nhwc):
    # 3x3, stride 1, padding 1 -> (N, H*W, 9*C) with (kh, kw, cin) ordering.
    n, h, w, c = x_nhwc.shape
    xp = jnp.pad(x_nhwc, ((0, 0), (1, 1), (1, 1), (0, 0)))
    shifts = [xp[:, dh:dh + h, dw:dw + w, :] for dh in range(3) for dw in range(3)]
    p = jnp.stack(shifts, axis=-2)                  # (N, H, W, 9, C)
    return p.reshape(n, h * w, 9 * c)


def _pick_chunk_hw(hw, max_chunk=1024):
    # Largest divisor of hw that is a multiple of 8, <= max_chunk, and leaves
    # >= 2 chunks when possible (so the chunk axis actually pipelines).
    limit = min(max_chunk, hw)
    if hw >= 16:
        limit = min(limit, hw // 2)
    best = None
    d = 8
    while d <= limit:
        if hw % d == 0:
            best = d
        d += 8
    return best if best is not None else hw


# ----------------------------------------------------------------------------
# TripletNetwork forward
# ----------------------------------------------------------------------------
class TripletNetworkPallas:
    """Shared embedding net applied to (anchor, positive, negative)."""

    SPT = 8  # samples per tile (>= 8 so the embed matmul / output store are unmasked)

    def __init__(self, key, c_in=3, c_hidden=128, embed_dim=512):
        k1, k2, k3, k4 = jax.random.split(key, 4)
        self.c_in = c_in
        self.c_hidden = c_hidden
        self.embed_dim = embed_dim
        k_raw = 9 * c_in
        self.k_raw = k_raw
        self.k_pad = ((k_raw + 31) // 32) * 32      # lane/sublane-friendly K

        # conv weight stored PyTorch-style (C_out, C_in, 3, 3), rearranged to
        # (kh*kw*C_in, C_out) to match the im2col ordering, K zero-padded.
        w_conv = jax.random.normal(k1, (c_hidden, c_in, 3, 3), jnp.float32) * 0.1
        w_conv = jnp.transpose(w_conv, (2, 3, 1, 0)).reshape(k_raw, c_hidden)
        w_conv = jnp.pad(w_conv, ((0, self.k_pad - k_raw), (0, 0)))
        self.w_conv = w_conv.astype(jnp.bfloat16)
        self.b_conv = jax.random.normal(k2, (1, c_hidden), jnp.float32) * 0.01
        self.w_emb = (jax.random.normal(k3, (c_hidden, embed_dim), jnp.float32)
                      * 0.05).astype(jnp.bfloat16)
        self.b_emb = jax.random.normal(k4, (1, embed_dim), jnp.float32) * 0.01

    def _embed_batch(self, x_nchw):
        b, c, h, w = x_nchw.shape
        hw = h * w
        # NCHW -> NHWC, cast to bf16 BEFORE the im2col stack so the staged
        # intermediate is half-width in HBM.
        x = jnp.transpose(x_nchw, (0, 2, 3, 1)).astype(jnp.bfloat16)
        patches = im2col_3x3(x)                                      # (b, hw, 9*C) bf16
        patches = jnp.pad(patches, ((0, 0), (0, 0), (0, self.k_pad - self.k_raw)))

        # Pad the (triplet) batch to a multiple of SPT samples per tile.
        spt = self.SPT
        b_pad = -(-b // spt) * spt
        if b_pad != b:
            patches = jnp.pad(patches, ((0, b_pad - b), (0, 0), (0, 0)))
        num_tiles = b_pad // spt
        chunk_hw = _pick_chunk_hw(hw)

        emb = fused_forward_pallas(patches, self.w_conv, self.b_conv,
                                   self.w_emb, self.b_emb,
                                   num_tiles=num_tiles, spt=spt,
                                   hw=hw, chunk_hw=chunk_hw)
        return emb[:b]

    def forward_once(self, x_nchw):
        return self._embed_batch(x_nchw)

    def __call__(self, anchor, positive, negative):
        # Batch the triplet: one backbone pass / one pallas_call for all three.
        n = anchor.shape[0]
        x = jnp.concatenate([anchor, positive, negative], axis=0)    # (3N, C, H, W)
        emb = self._embed_batch(x)                                   # (3N, E)
        return emb[:n], emb[n:2 * n], emb[2 * n:]


# ----------------------------------------------------------------------------
# Pure-JAX reference (same weights / same input rounding) for a sanity check
# ----------------------------------------------------------------------------
def _reference_embed(net, x_nchw):
    b, c_in, h, w = x_nchw.shape
    x = jnp.transpose(x_nchw, (0, 2, 3, 1)).astype(jnp.bfloat16).astype(jnp.float32)
    patches = im2col_3x3(x)                                          # (b, hw, 9*C) f32
    wc = net.w_conv.astype(jnp.float32)[: 9 * c_in]
    acti = jnp.maximum(jnp.einsum("bpk,kc->bpc", patches, wc) + net.b_conv[0], 0.0)
    pooled = jnp.mean(acti, axis=1)
    emb = pooled @ net.w_emb.astype(jnp.float32) + net.b_emb[0]
    return emb / jnp.linalg.norm(emb, axis=-1, keepdims=True)


if __name__ == "__main__":
    key = jax.random.PRNGKey(0)
    k_params, k_a, k_p, k_n = jax.random.split(key, 4)

    net = TripletNetworkPallas(k_params, c_in=3, c_hidden=128, embed_dim=512)

    # Small NCHW face-crop-like inputs: batch=2, 3 channels, 16x16 spatial.
    shape = (2, 3, 16, 16)
    anchor = jax.random.normal(k_a, shape, jnp.float32)
    positive = jax.random.normal(k_p, shape, jnp.float32)
    negative = jax.random.normal(k_n, shape, jnp.float32)

    fwd = jax.jit(lambda a, p, n: net(a, p, n))
    out_a, out_p, out_n = fwd(anchor, positive, negative)
    jax.block_until_ready((out_a, out_p, out_n))

    assert out_a.shape == (2, 512) and out_p.shape == (2, 512) and out_n.shape == (2, 512)
    # Embeddings are L2-normalized along the feature dim.
    assert bool(jnp.allclose(jnp.linalg.norm(out_a, axis=-1), 1.0, atol=1e-4))
    assert bool(jnp.allclose(jnp.linalg.norm(out_n, axis=-1), 1.0, atol=1e-4))

    # Compare against a pure-JAX reference (bf16-matmul tolerance).
    ref_a = _reference_embed(net, anchor)
    ref_n = _reference_embed(net, negative)
    assert bool(jnp.allclose(out_a, ref_a, atol=2e-2))
    assert bool(jnp.allclose(out_n, ref_n, atol=2e-2))

    print("KERNEL_OK")
</pallas_src>

<mosaic_0001>
module attributes {stable_mosaic.version = 11 : i64} {
  func.func @fused_embed_kernel(%arg0: i32, %arg1: i32, %arg2: memref<8x128x32xbf16, #tpu.memory_space<vmem>>, %arg3: memref<32x128xbf16, #tpu.memory_space<vmem>>, %arg4: memref<1x128xf32, #tpu.memory_space<vmem>>, %arg5: memref<128x512xbf16, #tpu.memory_space<vmem>>, %arg6: memref<1x512xf32, #tpu.memory_space<vmem>>, %arg7: memref<8x512xf32, #tpu.memory_space<vmem>>, %arg8: memref<8x128xf32, #tpu.memory_space<vmem>>) attributes {dimension_semantics = [#tpu.dimension_semantics<parallel>, #tpu.dimension_semantics<arbitrary>], iteration_bounds = array<i64: 1, 2>, scalar_prefetch = 0 : i64, scratch_operands = 1 : i64, tpu.core_type = #tpu.core_type<tc>, window_params = [{transform_indices = @transform_0, window_bounds = array<i64: 8, 128, 32>}, {pipeline_mode = #tpu.pipeline_mode<synchronous>, transform_indices = @transform_1, window_bounds = array<i64: 32, 128>}, {pipeline_mode = #tpu.pipeline_mode<synchronous>, transform_indices = @transform_2, window_bounds = array<i64: 1, 128>}, {pipeline_mode = #tpu.pipeline_mode<synchronous>, transform_indices = @transform_3, window_bounds = array<i64: 128, 512>}, {pipeline_mode = #tpu.pipeline_mode<synchronous>, transform_indices = @transform_4, window_bounds = array<i64: 1, 512>}, {transform_indices = @transform_5, window_bounds = array<i64: 8, 512>}]} {
    %c0_i32 = arith.constant 0 : i32
    %0 = arith.cmpi eq, %arg1, %c0_i32 : i32
    %1 = arith.extui %0 : i1 to i32
    %c0_i32_0 = arith.constant 0 : i32
    %2 = arith.cmpi ne, %1, %c0_i32_0 : i32
    scf.if %2 {
      %cst_14 = arith.constant 0.000000e+00 : f32
      %20 = vector.broadcast %cst_14 : f32 to vector<8x128xf32>
      %c0_15 = arith.constant 0 : index
      %c0_16 = arith.constant 0 : index
      %21 = vector.load %arg8[%c0_15, %c0_16] : memref<8x128xf32, #tpu.memory_space<vmem>>, vector<8x128xf32>
      tpu.vector_store %arg8[%c0_15, %c0_16], %20 {strides = array<i32>} : memref<8x128xf32, #tpu.memory_space<vmem>>, vector<8x128xf32>,
    } else {
    }
    %c0 = arith.constant 0 : index
    %c0_1 = arith.constant 0 : index
    %c0_2 = arith.constant 0 : index
    %3 = vector.load %arg2[%c0, %c0_1, %c0_2] : memref<8x128x32xbf16, #tpu.memory_space<vmem>>, vector<8x128x32xbf16>
    %4 = vector.shape_cast %3 : vector<8x128x32xbf16> to vector<1024x32xbf16>
    %c0_3 = arith.constant 0 : index
    %c0_4 = arith.constant 0 : index
    %5 = vector.load %arg3[%c0_3, %c0_4] : memref<32x128xbf16, #tpu.memory_space<vmem>>, vector<32x128xbf16>
    %cst = arith.constant dense<0.000000e+00> : vector<1024x128xf32>
    %6 = tpu.matmul %4, %5, %cst {dimension_numbers = #tpu.dot_dimension_numbers<[1], [0], [0], [1], [0, 0, 1, 1], [], []>} : vector<1024x32xbf16>, vector<32x128xbf16>, vector<1024x128xf32> -> vector<1024x128xf32>
    %c0_5 = arith.constant 0 : index
    %c0_6 = arith.constant 0 : index
    %7 = vector.load %arg4[%c0_5, %c0_6] : memref<1x128xf32, #tpu.memory_space<vmem>>, vector<1x128xf32>
    %8 = vector.broadcast %7 : vector<1x128xf32> to vector<1024x128xf32>
    %9 = arith.addf %6, %8 : vector<1024x128xf32>
    %cst_7 = arith.constant 0.000000e+00 : f32
    %10 = vector.broadcast %cst_7 : f32 to vector<1024x128xf32>
    %11 = arith.maximumf %9, %10 : vector<1024x128xf32>
    %c0_8 = arith.constant 0 : index
    %c0_9 = arith.constant 0 : index
    %12 = vector.load %arg8[%c0_8, %c0_9] : memref<8x128xf32, #tpu.memory_space<vmem>>, vector<8x128xf32>
    %13 = vector.shape_cast %11 : vector<1024x128xf32> to vector<8x128x128xf32>
    %cst_10 = arith.constant dense<0.000000e+00> : vector<8x128xf32>
    %14 = vector.multi_reduction <add>, %13, %cst_10 [1] : vector<8x128x128xf32> to vector<8x128xf32>
    %15 = arith.addf %12, %14 : vector<8x128xf32>
    %c0_11 = arith.constant 0 : index
    %c0_12 = arith.constant 0 : index
    %16 = vector.load %arg8[%c0_11, %c0_12] : memref<8x128xf32, #tpu.memory_space<vmem>>, vector<8x128xf32>
    tpu.vector_store %arg8[%c0_11, %c0_12], %15 {strides = array<i32>} : memref<8x128xf32, #tpu.memory_space<vmem>>, vector<8x128xf32>,
    %c1_i32 = arith.constant 1 : i32
    %17 = arith.cmpi eq, %arg1, %c1_i32 : i32
    %18 = arith.extui %17 : i1 to i32
    %c0_i32_13 = arith.constant 0 : i32
    %19 = arith.cmpi ne, %18, %c0_i32_13 : i32
    scf.if %19 {
      %c0_14 = arith.constant 0 : index
      %c0_15 = arith.constant 0 : index
      %20 = vector.load %arg8[%c0_14, %c0_15] : memref<8x128xf32, #tpu.memory_space<vmem>>, vector<8x128xf32>
      %cst_16 = arith.constant 3.906250e-03 : f32
      %21 = vector.broadcast %cst_16 : f32 to vector<8x128xf32>
      %22 = arith.mulf %20, %21 : vector<8x128xf32>
      %23 = arith.truncf %22 : vector<8x128xf32> to vector<8x128xbf16>
      %c0_17 = arith.constant 0 : index
      %c0_18 = arith.constant 0 : index
      %24 = vector.load %arg5[%c0_17, %c0_18] : memref<128x512xbf16, #tpu.memory_space<vmem>>, vector<128x512xbf16>
      %cst_19 = arith.constant dense<0.000000e+00> : vector<8x512xf32>
      %25 = tpu.matmul %23, %24, %cst_19 {dimension_numbers = #tpu.dot_dimension_numbers<[1], [0], [0], [1], [0, 0, 1, 1], [], []>} : vector<8x128xbf16>, vector<128x512xbf16>, vector<8x512xf32> -> vector<8x512xf32>
      %c0_20 = arith.constant 0 : index
      %c0_21 = arith.constant 0 : index
      %26 = vector.load %arg6[%c0_20, %c0_21] : memref<1x512xf32, #tpu.memory_space<vmem>>, vector<1x512xf32>
      %27 = vector.broadcast %26 : vector<1x512xf32> to vector<8x512xf32>
      %28 = arith.addf %25, %27 : vector<8x512xf32>
      %29 = arith.mulf %28, %28 : vector<8x512xf32>
      %cst_22 = arith.constant dense<0.000000e+00> : vector<8xf32>
      %30 = vector.multi_reduction <add>, %29, %cst_22 [1] : vector<8x512xf32> to vector<8xf32>
      %31 = vector.shape_cast %30 : vector<8xf32> to vector<8x1xf32>
      %cst_23 = arith.constant 9.99999996E-13 : f32
      %32 = vector.broadcast %cst_23 : f32 to vector<8x1xf32>
      %33 = arith.addf %31, %32 : vector<8x1xf32>
      %34 = math.rsqrt %33 : vector<8x1xf32>
      %35 = vector.broadcast %34 : vector<8x1xf32> to vector<8x512xf32>
      %36 = arith.mulf %28, %35 : vector<8x512xf32>
      %c0_24 = arith.constant 0 : index
      %c0_25 = arith.constant 0 : index
      %37 = vector.load %arg7[%c0_24, %c0_25] : memref<8x512xf32, #tpu.memory_space<vmem>>, vector<8x512xf32>
      tpu.vector_store %arg7[%c0_24, %c0_25], %36 {strides = array<i32>} : memref<8x512xf32, #tpu.memory_space<vmem>>, vector<8x512xf32>,
    } else {
    }
    return
  }
  func.func @transform_0(%arg0: i32, %arg1: i32) -> (i32, i32, i32) {
    %c0_i32 = arith.constant 0 : i32
    %c0_i32_0 = arith.constant 0 : i32
    return %arg0, %arg1, %c0_i32 : i32, i32, i32
  }
  func.func @transform_1(%arg0: i32, %arg1: i32) -> (i32, i32) {
    %c0_i32 = arith.constant 0 : i32
    %c0_i32_0 = arith.constant 0 : i32
    %c0_i32_1 = arith.constant 0 : i32
    return %c0_i32, %c0_i32_0 : i32, i32
  }
  func.func @transform_2(%arg0: i32, %arg1: i32) -> (i32, i32) {
    %c0_i32 = arith.constant 0 : i32
    %c0_i32_0 = arith.constant 0 : i32
    %c0_i32_1 = arith.constant 0 : i32
    return %c0_i32, %c0_i32_0 : i32, i32
  }
  func.func @transform_3(%arg0: i32, %arg1: i32) -> (i32, i32) {
    %c0_i32 = arith.constant 0 : i32
    %c0_i32_0 = arith.constant 0 : i32
    %c0_i32_1 = arith.constant 0 : i32
    return %c0_i32, %c0_i32_0 : i32, i32
  }
  func.func @transform_4(%arg0: i32, %arg1: i32) -> (i32, i32) {
    %c0_i32 = arith.constant 0 : i32
    %c0_i32_0 = arith.constant 0 : i32
    %c0_i32_1 = arith.constant 0 : i32
    return %c0_i32, %c0_i32_0 : i32, i32
  }
  func.func @transform_5(%arg0: i32, %arg1: i32) -> (i32, i32) {
    %c0_i32 = arith.constant 0 : i32
    %c0_i32_0 = arith.constant 0 : i32
    return %arg0, %c0_i32 : i32, i32
  }
}

</mosaic_0001>

<bundles_post_ra>
// kernel: _lambda_.1
= control target key start
LH: loop header
LB: loop body
LE: loop exit
PB: predicated region body
PF: predicated region fallthrough
CT: control target
= control target key end

     0   :  { %s3333_s18 = smov 0   ;;  %s3335_s19 = smov 0   ;;  %s3931_s0 = inlined_call_operand.vmem [shape: bf16[8,256,32], index: 0, kind: input, shape index: {}]   ;;  %s3932_s1 = inlined_call_operand.vmem [shape: bf16[32,128], index: 1, kind: input, shape index: {}]   ;;  %s3933_s2 = inlined_call_operand.vmem [shape: f32[1,128], index: 2, kind: input, shape index: {}]   ;;  %s3934_s3 = inlined_call_operand.vmem [shape: bf16[128,512], index: 3, kind: input, shape index: {}]   ;;  %s3935_s4 = inlined_call_operand.vmem [shape: f32[1,512], index: 4, kind: input, shape index: {}]   ;;  %s3936_s5 = inlined_call_operand.vmem [shape: f32[8,512], index: 5, kind: output, shape index: {}]  }
   0x1   :  { %s3337_s20 = smov 0   ;;  %s3339_s21 = smov 0  }
   0x2   :  { %s3341_s22 = smov 0  }
   0x3 LB: > { %s24_s23 = sadd.s32 1, %s3295_s21  ;;  %p43_p1 = scmp.ne.s32.totalorder %s3287_s19, %s3283_s18  ;;  %s3299_s22 = sphi %s3341_s22, %s15_s22   ;;  %s3295_s21 = sphi %s3339_s21, %s3940_s21   ;;  %s3291_s20 = sphi %s3337_s20, %s3939_s20   ;;  %s3287_s19 = sphi %s3335_s19, %s3938_s19   ;;  %s3283_s18 = sphi %s3333_s18, %s3937_s18  }
   0x4   : > { %p25_p0 = scmp.ge.s32.totalorder %s24_s23, 2  ;;  %p44_p2 = scmp.eq.s32.totalorder %s3299_s22, 0 }
   0x5   : > { %s36_s25 = sadd.s32 1, %s3287_s19  ;;  %p2725_p5 = scmp.ge.s32.totalorder %s3299_s22, 2 }
   0x6   : > { %s3942_s23 = smov (%p25_p0, %s24_s23), 0  ;;  %p45_p3 = por %p44_p2, %p43_p1 }
   0x7   : > { %s32_s24 = ssub.s32 %s3295_s21, %s3942_s23  ;;  %191 = sbr.rel (%p2725_p5) target bundleno = 50 (0x32), region = 32 }
   0x8   : > { %p34_p4 = scmp.eq.s32.totalorder %s32_s24, 0 }
   0xa   : > { %s3368_s26 = scalar_select %p34_p4, %s3287_s19, %s36_s25  }
   0xe   : > { %194 = sbr.rel (!%p45_p3) target bundleno = 50 (0x32), region = 36  ;;  %s196_s27 = sand.u32 (%p45_p3), 1, %s3287_s19  }
   0xf   : > { %s2899_s28 = sshll.u32 (%p45_p3), %s3295_s21, 6  ;;  %s2726_s29 = sshll.u32 (%p45_p3), %s196_s27, 9 }
  0x10   : > { %s3376_s7 = scalar_lea.vmem (%p45_p3), %s3931_s0, %s2899_s28  ;;  %s3381_s8 = scalar_lea.vmem (%p45_p3), [#allocation3], %s2726_s29 }
  0x11   : > { %v220_v0 = vld [vmem:[%s3376_s7] sm:$0xff] (%p45_p3)   ;;  %v224_v1 = vld [vmem:[%s3376_s7 + $0x8] sm:$0xff] (%p45_p3)   ;;  %v228_v2 = vld [vmem:[%s3376_s7 + $0x10] sm:$0xff] (%p45_p3)  }
  0x12   : > { %221 = vst [vmem:[%s3381_s8] sm:$0xff] (%p45_p3), %v220_v0   ;;  %225 = vst [vmem:[%s3381_s8 + $0x8] sm:$0xff] (%p45_p3), %v224_v1   ;;  %v232_v3 = vld [vmem:[%s3376_s7 + $0x18] sm:$0xff] (%p45_p3)   ;;  %v236_v4 = vld [vmem:[%s3376_s7 + $0x20] sm:$0xff] (%p45_p3)  }
  0x13   : > { %229 = vst [vmem:[%s3381_s8 + $0x10] sm:$0xff] (%p45_p3), %v228_v2   ;;  %v240_v5 = vld [vmem:[%s3376_s7 + $0x28] sm:$0xff] (%p45_p3)   ;;  %233 = vst [vmem:[%s3381_s8 + $0x18] sm:$0xff] (%p45_p3), %v232_v3   ;;  %v244_v6 = vld [vmem:[%s3376_s7 + $0x30] sm:$0xff] (%p45_p3)  }
  0x14   : > { %237 = vst [vmem:[%s3381_s8 + $0x20] sm:$0xff] (%p45_p3), %v236_v4   ;;  %241 = vst [vmem:[%s3381_s8 + $0x28] sm:$0xff] (%p45_p3), %v240_v5   ;;  %v248_v7 = vld [vmem:[%s3376_s7 + $0x38] sm:$0xff] (%p45_p3)   ;;  %v252_v8 = vld [vmem:[%s3376_s7 + $0x80] sm:$0xff] (%p45_p3)  }
  0x15   : > { %245 = vst [vmem:[%s3381_s8 + $0x30] sm:$0xff] %v244_v6   ;;  %249 = vst [vmem:[%s3381_s8 + $0x38] sm:$0xff] %v248_v7   ;;  %v256_v9 = vld [vmem:[%s3376_s7 + $0x88] sm:$0xff]   ;;  %v260_v10 = vld [vmem:[%s3376_s7 + $0x90] sm:$0xff]  }
  0x16   : > { %253 = vst [vmem:[%s3381_s8 + $0x40] sm:$0xff] %v252_v8   ;;  %v264_v11 = vld [vmem:[%s3376_s7 + $0x98] sm:$0xff]   ;;  %257 = vst [vmem:[%s3381_s8 + $0x48] sm:$0xff] %v256_v9   ;;  %v268_v12 = vld [vmem:[%s3376_s7 + $0xa0] sm:$0xff]  }
  0x17   : > { %261 = vst [vmem:[%s3381_s8 + $0x50] sm:$0xff] %v260_v10   ;;  %265 = vst [vmem:[%s3381_s8 + $0x58] sm:$0xff] %v264_v11   ;;  %v272_v13 = vld [vmem:[%s3376_s7 + $0xa8] sm:$0xff]   ;;  %v276_v14 = vld [vmem:[%s3376_s7 + $0xb0] sm:$0xff]  }
  0x18   : > { %269 = vst [vmem:[%s3381_s8 + $0x60] sm:$0xff] %v268_v12   ;;  %273 = vst [vmem:[%s3381_s8 + $0x68] sm:$0xff] %v272_v13   ;;  %v280_v15 = vld [vmem:[%s3376_s7 + $0xb8] sm:$0xff]   ;;  %v284_v16 = vld [vmem:[%s3376_s7 + $0x100] sm:$0xff]  }
  0x19   : > { %277 = vst [vmem:[%s3381_s8 + $0x70] sm:$0xff] %v276_v14   ;;  %v288_v17 = vld [vmem:[%s3376_s7 + $0x108] sm:$0xff]   ;;  %281 = vst [vmem:[%s3381_s8 + $0x78] sm:$0xff] %v280_v15   ;;  %v292_v18 = vld [vmem:[%s3376_s7 + $0x110] sm:$0xff]  }
  0x1a   : > { %285 = vst [vmem:[%s3381_s8 + $0x80] sm:$0xff] %v284_v16   ;;  %289 = vst [vmem:[%s3381_s8 + $0x88] sm:$0xff] %v288_v17   ;;  %v296_v19 = vld [vmem:[%s3376_s7 + $0x118] sm:$0xff]   ;;  %v300_v20 = vld [vmem:[%s3376_s7 + $0x120] sm:$0xff]  }
  0x1b   : > { %293 = vst [vmem:[%s3381_s8 + $0x90] sm:$0xff] %v292_v18   ;;  %297 = vst [vmem:[%s3381_s8 + $0x98] sm:$0xff] %v296_v19   ;;  %v304_v21 = vld [vmem:[%s3376_s7 + $0x128] sm:$0xff]   ;;  %v308_v22 = vld [vmem:[%s3376_s7 + $0x130] sm:$0xff]  }
  0x1c   : > { %301 = vst [vmem:[%s3381_s8 + $0xa0] sm:$0xff] %v300_v20   ;;  %v312_v23 = vld [vmem:[%s3376_s7 + $0x138] sm:$0xff]   ;;  %305 = vst [vmem:[%s3381_s8 + $0xa8] sm:$0xff] %v304_v21   ;;  %v316_v24 = vld [vmem:[%s3376_s7 + $0x180] sm:$0xff]  }
  0x1d   : > { %309 = vst [vmem:[%s3381_s8 + $0xb0] sm:$0xff] %v308_v22   ;;  %313 = vst [vmem:[%s3381_s8 + $0xb8] sm:$0xff] %v312_v23   ;;  %v320_v25 = vld [vmem:[%s3376_s7 + $0x188] sm:$0xff]   ;;  %v324_v26 = vld [vmem:[%s3376_s7 + $0x190] sm:$0xff]  }
  0x1e   : > { %317 = vst [vmem:[%s3381_s8 + $0xc0] sm:$0xff] %v316_v24   ;;  %321 = vst [vmem:[%s3381_s8 + $0xc8] sm:$0xff] %v320_v25   ;;  %v328_v27 = vld [vmem:[%s3376_s7 + $0x198] sm:$0xff]   ;;  %v332_v28 = vld [vmem:[%s3376_s7 + $0x1a0] sm:$0xff]  }
  0x1f   : > { %325 = vst [vmem:[%s3381_s8 + $0xd0] sm:$0xff] %v324_v26   ;;  %v336_v29 = vld [vmem:[%s3376_s7 + $0x1a8] sm:$0xff]   ;;  %329 = vst [vmem:[%s3381_s8 + $0xd8] sm:$0xff] %v328_v27   ;;  %v340_v30 = vld [vmem:[%s3376_s7 + $0x1b0] sm:$0xff]  }
  0x20   : > { %333 = vst [vmem:[%s3381_s8 + $0xe0] sm:$0xff] %v332_v28   ;;  %337 = vst [vmem:[%s3381_s8 + $0xe8] sm:$0xff] %v336_v29   ;;  %v344_v31 = vld [vmem:[%s3376_s7 + $0x1b8] sm:$0xff]   ;;  %v348_v32 = vld [vmem:[%s3376_s7 + $0x200] sm:$0xff]  }
  0x21   : > { %341 = vst [vmem:[%s3381_s8 + $0xf0] sm:$0xff] %v340_v30   ;;  %345 = vst [vmem:[%s3381_s8 + $0xf8] sm:$0xff] %v344_v31   ;;  %v352_v33 = vld [vmem:[%s3376_s7 + $0x208] sm:$0xff]   ;;  %v356_v34 = vld [vmem:[%s3376_s7 + $0x210] sm:$0xff]  }
  0x22   : > { %349 = vst [vmem:[%s3381_s8 + $0x100] sm:$0xff] %v348_v32   ;;  %v360_v35 = vld [vmem:[%s3376_s7 + $0x218] sm:$0xff]   ;;  %353 = vst [vmem:[%s3381_s8 + $0x108] sm:$0xff] %v352_v33   ;;  %v364_v36 = vld [vmem:[%s3376_s7 + $0x220] sm:$0xff]  }
  0x23   : > { %357 = vst [vmem:[%s3381_s8 + $0x110] sm:$0xff] %v356_v34   ;;  %361 = vst [vmem:[%s3381_s8 + $0x118] sm:$0xff] %v360_v35   ;;  %v368_v37 = vld [vmem:[%s3376_s7 + $0x228] sm:$0xff]   ;;  %v372_v38 = vld [vmem:[%s3376_s7 + $0x230] sm:$0xff]  }
  0x24   : > { %365 = vst [vmem:[%s3381_s8 + $0x120] sm:$0xff] %v364_v36   ;;  %369 = vst [vmem:[%s3381_s8 + $0x128] sm:$0xff] %v368_v37   ;;  %v376_v39 = vld [vmem:[%s3376_s7 + $0x238] sm:$0xff]   ;;  %v380_v40 = vld [vmem:[%s3376_s7 + $0x280] sm:$0xff]  }
  0x25   : > { %373 = vst [vmem:[%s3381_s8 + $0x130] sm:$0xff] %v372_v38   ;;  %v384_v41 = vld [vmem:[%s3376_s7 + $0x288] sm:$0xff]   ;;  %377 = vst [vmem:[%s3381_s8 + $0x138] sm:$0xff] %v376_v39   ;;  %v388_v42 = vld [vmem:[%s3376_s7 + $0x290] sm:$0xff]  }
  0x26   : > { %381 = vst [vmem:[%s3381_s8 + $0x140] sm:$0xff] %v380_v40   ;;  %385 = vst [vmem:[%s3381_s8 + $0x148] sm:$0xff] %v384_v41   ;;  %v392_v43 = vld [vmem:[%s3376_s7 + $0x298] sm:$0xff]   ;;  %v396_v44 = vld [vmem:[%s3376_s7 + $0x2a0] sm:$0xff]  }
  0x27   : > { %389 = vst [vmem:[%s3381_s8 + $0x150] sm:$0xff] %v388_v42   ;;  %393 = vst [vmem:[%s3381_s8 + $0x158] sm:$0xff] %v392_v43   ;;  %v400_v45 = vld [vmem:[%s3376_s7 + $0x2a8] sm:$0xff]   ;;  %v404_v46 = vld [vmem:[%s3376_s7 + $0x2b0] sm:$0xff]  }
  0x28   : > { %397 = vst [vmem:[%s3381_s8 + $0x160] sm:$0xff] %v396_v44   ;;  %v408_v47 = vld [vmem:[%s3376_s7 + $0x2b8] sm:$0xff]   ;;  %401 = vst [vmem:[%s3381_s8 + $0x168] sm:$0xff] %v400_v45   ;;  %v412_v48 = vld [vmem:[%s3376_s7 + $0x300] sm:$0xff]  }
  0x29   : > { %405 = vst [vmem:[%s3381_s8 + $0x170] sm:$0xff] %v404_v46   ;;  %409 = vst [vmem:[%s3381_s8 + $0x178] sm:$0xff] %v408_v47   ;;  %v416_v49 = vld [vmem:[%s3376_s7 + $0x308] sm:$0xff]   ;;  %v420_v50 = vld [vmem:[%s3376_s7 + $0x310] sm:$0xff]  }
  0x2a   : > { %413 = vst [vmem:[%s3381_s8 + $0x180] sm:$0xff] %v412_v48   ;;  %417 = vst [vmem:[%s3381_s8 + $0x188] sm:$0xff] %v416_v49   ;;  %v424_v51 = vld [vmem:[%s3376_s7 + $0x318] sm:$0xff]   ;;  %v428_v52 = vld [vmem:[%s3376_s7 + $0x320] sm:$0xff]  }
  0x2b   : > { %421 = vst [vmem:[%s3381_s8 + $0x190] sm:$0xff] %v420_v50   ;;  %v432_v53 = vld [vmem:[%s3376_s7 + $0x328] sm:$0xff]   ;;  %425 = vst [vmem:[%s3381_s8 + $0x198] sm:$0xff] %v424_v51   ;;  %v436_v54 = vld [vmem:[%s3376_s7 + $0x330] sm:$0xff]  }
  0x2c   : > { %429 = vst [vmem:[%s3381_s8 + $0x1a0] sm:$0xff] %v428_v52   ;;  %433 = vst [vmem:[%s3381_s8 + $0x1a8] sm:$0xff] %v432_v53   ;;  %v440_v55 = vld [vmem:[%s3376_s7 + $0x338] sm:$0xff]   ;;  %v444_v56 = vld [vmem:[%s3376_s7 + $0x380] sm:$0xff]  }
  0x2d   : > { %437 = vst [vmem:[%s3381_s8 + $0x1b0] sm:$0xff] %v436_v54   ;;  %441 = vst [vmem:[%s3381_s8 + $0x1b8] sm:$0xff] %v440_v55   ;;  %v448_v57 = vld [vmem:[%s3376_s7 + $0x388] sm:$0xff]   ;;  %v452_v58 = vld [vmem:[%s3376_s7 + $0x390] sm:$0xff]  }
  0x2e   : > { %445 = vst [vmem:[%s3381_s8 + $0x1c0] sm:$0xff] %v444_v56   ;;  %v456_v59 = vld [vmem:[%s3376_s7 + $0x398] sm:$0xff]   ;;  %449 = vst [vmem:[%s3381_s8 + $0x1c8] sm:$0xff] %v448_v57   ;;  %v460_v60 = vld [vmem:[%s3376_s7 + $0x3a0] sm:$0xff]  }
  0x2f   : > { %453 = vst [vmem:[%s3381_s8 + $0x1d0] sm:$0xff] %v452_v58   ;;  %457 = vst [vmem:[%s3381_s8 + $0x1d8] sm:$0xff] %v456_v59   ;;  %v464_v61 = vld [vmem:[%s3376_s7 + $0x3a8] sm:$0xff]   ;;  %v468_v62 = vld [vmem:[%s3376_s7 + $0x3b0] sm:$0xff]  }
  0x30   : > { %461 = vst [vmem:[%s3381_s8 + $0x1e0] sm:$0xff] %v460_v60   ;;  %465 = vst [vmem:[%s3381_s8 + $0x1e8] sm:$0xff] %v464_v61   ;;  %v472_v63 = vld [vmem:[%s3376_s7 + $0x3b8] sm:$0xff]  }
  0x31   : > { %469 = vst [vmem:[%s3381_s8 + $0x1f0] sm:$0xff] %v468_v62   ;;  %473 = vst [vmem:[%s3381_s8 + $0x1f8] sm:$0xff] %v472_v63  }
  0x32 PF: > { %p2729_p6 = scmp.ge.s32.totalorder %s3299_s22, 1  ;;  %p753_p7 = scmp.lt.s32.totalorder %s3299_s22, 3 }
  0x34   : > { %p754_p8 = pnand %p2729_p6, %p753_p7 }
  0x35   : > { %s760_s9 = sand.u32 (!%p754_p8), 1, %s3283_s18   ;;  %p2731_p9 = scmp.ne.s32.totalorder (!%p754_p8), %s3291_s20, 0 }
  0x36   : > { %757 = sbr.rel (%p754_p8) target bundleno = 847 (0x34f), region = 77  ;;  %s2730_s10 = sshll.u32 (!%p754_p8), %s760_s9, 9 }
  0x37   : > { %s3511_s11 = scalar_lea.vmem (!%p754_p8), [#allocation3], %s2730_s10 }
  0x3d   : > { %798 = sbr.rel (%p2731_p9) target bundleno = 68 (0x44), region = 85  ;;  %v3301_v0 = vmov (!%p2731_p9), 0.0  }
  0x3e   : > { %799 = vst [vmem:[#allocation2] sm:$0xff] (!%p2731_p9), %v3301_v0 }
  0x44 PF: > { %v3144_v1 = vld [vmem:[%s3932_s1] sm:$0xff]   ;;  %v3145_v2 = vld [vmem:[%s3932_s1 + $0x8] sm:$0xff]   ;;  %vm1271_vm0 = vcmask 261120   ;;  %v3148_v5 = vld [vmem:[%s3511_s11 + $0x8] sm:$0xff]   ;;  %vm2314_vm1 = vcmask 1041409   ;;  %vm2316_vm2 = vcmask 1042434  }
  0x45   : > { %2966 = vmatprep.subr.bf16.mxu0 %v3144_v1  ;;  %3098 = vmatprep.subr.bf16.mxu1 %v3144_v1  ;;  %v3146_v3 = vld [vmem:[%s3511_s11] sm:$0xff]   ;;  %v3149_v6 = vld [vmem:[%s3511_s11 + $0x108] sm:$0xff]   ;;  %v3150_v7 = vld [vmem:[%s3511_s11 + $0x10] sm:$0xff]   ;;  %vm2318_vm3 = vcmask 1043459   ;;  %vm2320_vm4 = vcmask 1044484   ;;  %vm2322_vm5 = vcmask 1045509  }
  0x46   : > { %2967 = vmatpush3.bf16.msra.mxu0 %v3144_v1  ;;  %3100 = vmatpush3.bf16.msra.mxu1 %v3144_v1  ;;  %v3147_v4 = vld [vmem:[%s3511_s11 + $0x100] sm:$0xff]   ;;  %v3151_v8 = vld [vmem:[%s3511_s11 + $0x110] sm:$0xff]   ;;  %v3152_v9 = vld [vmem:[%s3511_s11 + $0x18] sm:$0xff]   ;;  %vm2324_vm6 = vcmask 1046534   ;;  %vm2326_vm7 = vcmask 1047559   ;;  %p2863_p10 = scmp.ne.s32.totalorder %s3291_s20, 1 }
  0x47   : > { %2968 = vmatprep.subr.bf16.mxu0 %v3145_v2  ;;  %3099 = vmatprep.subr.bf16.mxu1 %v3145_v2  ;;  %v3153_v10 = vld [vmem:[%s3511_s11 + $0x118] sm:$0xff]   ;;  %v3154_v11 = vld [vmem:[%s3511_s11 + $0x20] sm:$0xff]   ;;  %v3156_v13 = vld [vmem:[%s3511_s11 + $0x28] sm:$0xff]  }
  0x48   : > { %2970 = vmatprep.mubr.msk.bf16.mxu0 %vm1271_vm0, %v3146_v3  ;;  %3034 = vmatprep.mubr.msk.bf16.mxu1 %vm1271_vm0, %v3147_v4  ;;  %v3155_v12 = vld [vmem:[%s3511_s11 + $0x120] sm:$0xff]   ;;  %v3157_v14 = vld [vmem:[%s3511_s11 + $0x128] sm:$0xff]   ;;  %v3158_v15 = vld [vmem:[%s3511_s11 + $0x30] sm:$0xff]  }
  0x49   : > { %v3159_v16 = vld [vmem:[%s3511_s11 + $0x130] sm:$0xff]   ;;  %v3160_v17 = vld [vmem:[%s3511_s11 + $0x38] sm:$0xff]   ;;  %v3162_v19 = vld [vmem:[%s3511_s11 + $0x40] sm:$0xff]  }
  0x4a   : > { %2969 = vmatpush3.bf16.msra.mxu0 %v3145_v2  ;;  %3101 = vmatpush3.bf16.msra.mxu1 %v3145_v2  ;;  %v3161_v18 = vld [vmem:[%s3511_s11 + $0x138] sm:$0xff]   ;;  %v3163_v20 = vld [vmem:[%s3511_s11 + $0x140] sm:$0xff]   ;;  %v3164_v21 = vld [vmem:[%s3511_s11 + $0x48] sm:$0xff]  }
  0x4b   : > { %v3165_v22 = vld [vmem:[%s3511_s11 + $0x148] sm:$0xff]   ;;  %v3166_v23 = vld [vmem:[%s3511_s11 + $0x50] sm:$0xff]   ;;  %v3168_v25 = vld [vmem:[%s3511_s11 + $0x58] sm:$0xff]  }
  0x4c   : > { %v3167_v24 = vld [vmem:[%s3511_s11 + $0x150] sm:$0xff]   ;;  %v3169_v26 = vld [vmem:[%s3511_s11 + $0x158] sm:$0xff]   ;;  %v3170_v27 = vld [vmem:[%s3511_s11 + $0x60] sm:$0xff]  }
  0x4d   : > { %2971 = vmatmul.mubr.msk.bf16.vlgmr.msra.gmra.mrb[0].mxu0 %vm1271_vm0, %v3148_v5  ;;  %3035 = vmatmul.mubr.msk.bf16.vlgmr.msra.gmra.mrb[0].mxu1 %vm1271_vm0, %v3149_v6  ;;  %v3171_v28 = vld [vmem:[%s3511_s11 + $0x160] sm:$0xff]   ;;  %v3172_v29 = vld [vmem:[%s3511_s11 + $0x68] sm:$0xff]   ;;  %v3174_v31 = vld [vmem:[%s3511_s11 + $0x70] sm:$0xff]  }
  0x4e   : > { %2974 = vmatprep.mubr.msk.bf16.mxu0 %vm1271_vm0, %v3150_v7  ;;  %3038 = vmatprep.mubr.msk.bf16.mxu1 %vm1271_vm0, %v3151_v8  ;;  %v3173_v30 = vld [vmem:[%s3511_s11 + $0x168] sm:$0xff]   ;;  %v3175_v32 = vld [vmem:[%s3511_s11 + $0x170] sm:$0xff]   ;;  %v3176_v33 = vld [vmem:[%s3511_s11 + $0x78] sm:$0xff]  }
  0x4f   : > { %v3177_v34 = vld [vmem:[%s3511_s11 + $0x178] sm:$0xff]   ;;  %v3178_v35 = vld [vmem:[%s3511_s11 + $0x80] sm:$0xff]   ;;  %v3180_v37 = vld [vmem:[%s3511_s11 + $0x88] sm:$0xff]  }
  0x50   : > { %v3179_v36 = vld [vmem:[%s3511_s11 + $0x180] sm:$0xff]   ;;  %v3181_v38 = vld [vmem:[%s3511_s11 + $0x188] sm:$0xff]   ;;  %v3182_v39 = vld [vmem:[%s3511_s11 + $0x90] sm:$0xff]  }
  0x51   : > { %v3183_v40 = vld [vmem:[%s3511_s11 + $0x190] sm:$0xff]   ;;  %v3184_v41 = vld [vmem:[%s3511_s11 + $0x98] sm:$0xff]   ;;  %v3186_v43 = vld [vmem:[%s3511_s11 + $0xa0] sm:$0xff]  }
  0x52   : > { %v3185_v42 = vld [vmem:[%s3511_s11 + $0x198] sm:$0xff]   ;;  %v3187_v44 = vld [vmem:[%s3511_s11 + $0x1a0] sm:$0xff]   ;;  %v3188_v45 = vld [vmem:[%s3511_s11 + $0xa8] sm:$0xff]  }
  0x53   : > { %v3189_v46 = vld [vmem:[%s3511_s11 + $0x1a8] sm:$0xff]   ;;  %v3190_v47 = vld [vmem:[%s3511_s11 + $0xb0] sm:$0xff]   ;;  %v3192_v49 = vld [vmem:[%s3511_s11 + $0xb8] sm:$0xff]  }
  0x54   : > { %v3191_v48 = vld [vmem:[%s3511_s11 + $0x1b0] sm:$0xff]   ;;  %v3193_v50 = vld [vmem:[%s3511_s11 + $0x1b8] sm:$0xff]   ;;  %v3194_v51 = vld [vmem:[%s3511_s11 + $0xc0] sm:$0xff]  }
  0x55   : > { %2975 = vmatmul.mubr.msk.bf16.gmra.mrb[4].mxu0 %vm1271_vm0, %v3152_v9  ;;  %3039 = vmatmul.mubr.msk.bf16.gmra.mrb[4].mxu1 %vm1271_vm0, %v3153_v10  ;;  %v3195_v52 = vld [vmem:[%s3511_s11 + $0x1c0] sm:$0xff]   ;;  %v3196_v53 = vld [vmem:[%s3511_s11 + $0xc8] sm:$0xff]   ;;  %v3198_v55 = vld [vmem:[%s3511_s11 + $0xd0] sm:$0xff]  }
  0x56   : > { %2978 = vmatprep.mubr.msk.bf16.mxu0 %vm1271_vm0, %v3154_v11  ;;  %3042 = vmatprep.mubr.msk.bf16.mxu1 %vm1271_vm0, %v3155_v12  ;;  %v3197_v54 = vld [vmem:[%s3511_s11 + $0x1c8] sm:$0xff]   ;;  %v3199_v56 = vld [vmem:[%s3511_s11 + $0x1d0] sm:$0xff]   ;;  %v3200_v57 = vld [vmem:[%s3511_s11 + $0xd8] sm:$0xff]  }
  0x57   : > { %v3201_v58 = vld [vmem:[%s3511_s11 + $0x1d8] sm:$0xff]   ;;  %v3202_v59 = vld [vmem:[%s3511_s11 + $0xe0] sm:$0xff]   ;;  %v3204_v61 = vld [vmem:[%s3511_s11 + $0xe8] sm:$0xff]  }
  0x58   : > { %v3203_v60 = vld [vmem:[%s3511_s11 + $0x1e0] sm:$0xff]   ;;  %v3205_v62 = vld [vmem:[%s3511_s11 + $0x1e8] sm:$0xff]   ;;  %v3206_v63 = vld [vmem:[%s3511_s11 + $0xf0] sm:$0xff]  }
  0x59   : > { %v3207_v0 = vld [vmem:[%s3511_s11 + $0x1f0] sm:$0xff]   ;;  %v3208_v1 = vld [vmem:[%s3511_s11 + $0xf8] sm:$0xff]  }
  0x5a   : > { %v3209_v2 = vld [vmem:[%s3511_s11 + $0x1f8] sm:$0xff]  }
  0x5b   : > { %v3651_v3 = vld [vmem:[%s3933_s2] ss:$0 sm:$0xff] }
  0x5d   : > { %2979 = vmatmul.mubr.msk.bf16.gmra.mrb[8].mxu0 %vm1271_vm0, %v3156_v13  ;;  %3043 = vmatmul.mubr.msk.bf16.gmra.mrb[8].mxu1 %vm1271_vm0, %v3157_v14 }
  0x5e   : > { %2982 = vmatprep.mubr.msk.bf16.mxu0 %vm1271_vm0, %v3158_v15  ;;  %3046 = vmatprep.mubr.msk.bf16.mxu1 %vm1271_vm0, %v3159_v16 }
  0x65   : > { %2983 = vmatmul.mubr.msk.bf16.gmra.mrb[12].mxu0 %vm1271_vm0, %v3160_v17  ;;  %3047 = vmatmul.mubr.msk.bf16.gmra.mrb[12].mxu1 %vm1271_vm0, %v3161_v18 }
  0x66   : > { %2986 = vmatprep.mubr.msk.bf16.mxu0 %vm1271_vm0, %v3162_v19  ;;  %3050 = vmatprep.mubr.msk.bf16.mxu1 %vm1271_vm0, %v3163_v20 }
  0x6d   : > { %2987 = vmatmul.mubr.msk.bf16.gmra.mrb[16].mxu0 %vm1271_vm0, %v3164_v21  ;;  %3051 = vmatmul.mubr.msk.bf16.gmra.mrb[16].mxu1 %vm1271_vm0, %v3165_v22 }
  0x6e   : > { %2990 = vmatprep.mubr.msk.bf16.mxu0 %vm1271_vm0, %v3166_v23  ;;  %3054 = vmatprep.mubr.msk.bf16.mxu1 %vm1271_vm0, %v3167_v24 }
  0x75   : > { %2991 = vmatmul.mubr.msk.bf16.gmra.mrb[20].mxu0 %vm1271_vm0, %v3168_v25  ;;  %3055 = vmatmul.mubr.msk.bf16.gmra.mrb[20].mxu1 %vm1271_vm0, %v3169_v26 }
  0x76   : > { %2994 = vmatprep.mubr.msk.bf16.mxu0 %vm1271_vm0, %v3170_v27  ;;  %3058 = vmatprep.mubr.msk.bf16.mxu1 %vm1271_vm0, %v3171_v28 }
  0x7d   : > { %2995 = vmatmul.mubr.msk.bf16.gmra.mrb[24].mxu0 %vm1271_vm0, %v3172_v29  ;;  %3059 = vmatmul.mubr.msk.bf16.gmra.mrb[24].mxu1 %vm1271_vm0, %v3173_v30 }
  0x7e   : > { %2998 = vmatprep.mubr.msk.bf16.mxu0 %vm1271_vm0, %v3174_v31  ;;  %3062 = vmatprep.mubr.msk.bf16.mxu1 %vm1271_vm0, %v3175_v32 }
  0x85   : > { %2999 = vmatmul.mubr.msk.bf16.gmra.mrb[28].mxu0 %vm1271_vm0, %v3176_v33  ;;  %3063 = vmatmul.mubr.msk.bf16.gmra.mrb[28].mxu1 %vm1271_vm0, %v3177_v34 }
  0x86   : > { %3002 = vmatprep.mubr.msk.bf16.mxu0 %vm1271_vm0, %v3178_v35  ;;  %3066 = vmatprep.mubr.msk.bf16.mxu1 %vm1271_vm0, %v3179_v36 }
  0x8d   : > { %3003 = vmatmul.mubr.msk.bf16.gmra.mrb[32].mxu0 %vm1271_vm0, %v3180_v37  ;;  %3067 = vmatmul.mubr.msk.bf16.gmra.mrb[32].mxu1 %vm1271_vm0, %v3181_v38 }
  0x8e   : > { %3006 = vmatprep.mubr.msk.bf16.mxu0 %vm1271_vm0, %v3182_v39  ;;  %3070 = vmatprep.mubr.msk.bf16.mxu1 %vm1271_vm0, %v3183_v40 }
  0x95   : > { %3007 = vmatmul.mubr.msk.bf16.gmra.mrb[36].mxu0 %vm1271_vm0, %v3184_v41  ;;  %3071 = vmatmul.mubr.msk.bf16.gmra.mrb[36].mxu1 %vm1271_vm0, %v3185_v42 }
  0x96   : > { %3010 = vmatprep.mubr.msk.bf16.mxu0 %vm1271_vm0, %v3186_v43  ;;  %3074 = vmatprep.mubr.msk.bf16.mxu1 %vm1271_vm0, %v3187_v44 }
  0x9d   : > { %3011 = vmatmul.mubr.msk.bf16.gmra.mrb[40].mxu0 %vm1271_vm0, %v3188_v45  ;;  %3075 = vmatmul.mubr.msk.bf16.gmra.mrb[40].mxu1 %vm1271_vm0, %v3189_v46 }
  0x9e   : > { %3014 = vmatprep.mubr.msk.bf16.mxu0 %vm1271_vm0, %v3190_v47  ;;  %3078 = vmatprep.mubr.msk.bf16.mxu1 %vm1271_vm0, %v3191_v48 }
  0xa5   : > { %3015 = vmatmul.mubr.msk.bf16.gmra.mrb[44].mxu0 %vm1271_vm0, %v3192_v49  ;;  %3079 = vmatmul.mubr.msk.bf16.gmra.mrb[44].mxu1 %vm1271_vm0, %v3193_v50 }
  0xa6   : > { %3018 = vmatprep.mubr.msk.bf16.mxu0 %vm1271_vm0, %v3194_v51  ;;  %3082 = vmatprep.mubr.msk.bf16.mxu1 %vm1271_vm0, %v3195_v52 }
  0xad   : > { %3019 = vmatmul.mubr.msk.bf16.gmra.mrb[48].mxu0 %vm1271_vm0, %v3196_v53  ;;  %3083 = vmatmul.mubr.msk.bf16.gmra.mrb[48].mxu1 %vm1271_vm0, %v3197_v54 }
  0xae   : > { %3022 = vmatprep.mubr.msk.bf16.mxu0 %vm1271_vm0, %v3198_v55  ;;  %3086 = vmatprep.mubr.msk.bf16.mxu1 %vm1271_vm0, %v3199_v56 }
  0xb5   : > { %3023 = vmatmul.mubr.msk.bf16.gmra.mrb[52].mxu0 %vm1271_vm0, %v3200_v57  ;;  %3087 = vmatmul.mubr.msk.bf16.gmra.mrb[52].mxu1 %vm1271_vm0, %v3201_v58 }
  0xb6   : > { %3026 = vmatprep.mubr.msk.bf16.mxu0 %vm1271_vm0, %v3202_v59  ;;  %3090 = vmatprep.mubr.msk.bf16.mxu1 %vm1271_vm0, %v3203_v60 }
  0xbd   : > { %3027 = vmatmul.mubr.msk.bf16.gmra.mrb[56].mxu0 %vm1271_vm0, %v3204_v61  ;;  %3091 = vmatmul.mubr.msk.bf16.gmra.mrb[56].mxu1 %vm1271_vm0, %v3205_v62 }
  0xbe   : > { %3030 = vmatprep.mubr.msk.bf16.mxu0 %vm1271_vm0, %v3206_v63  ;;  %3094 = vmatprep.mubr.msk.bf16.mxu1 %vm1271_vm0, %v3207_v0 }
  0xc5   : > { %3031 = vmatmul.mubr.msk.bf16.gmra.mrb[60].mxu0 %vm1271_vm0, %v3208_v1  ;;  %3095 = vmatmul.mubr.msk.bf16.gmra.mrb[60].mxu1 %vm1271_vm0, %v3209_v2 }
 0x120   : > { %v2972_v4 = vpop.f32.mrb[0].mxu0  ;;  %v3036_v5 = vpop.f32.mrb[0].mxu1 }
 0x121   : > { %v1498_v6 = vpop.f32.mrb[1].mxu0  ;;  %v1754_v7 = vpop.f32.mrb[1].mxu1  ;;  %v1763_v8 = vadd.f32 %v3036_v5, %v3651_v3  ;;  %v1507_v15 = vadd.f32 %v2972_v4, %v3651_v3 }
 0x122   : > { %v1499_v9 = vadd.f32 %v3651_v3, %v1498_v6  ;;  %v1755_v10 = vadd.f32 %v3651_v3, %v1754_v7  ;;  %v2973_v11 = vpop.f32.mrb[2].mxu0  ;;  %v3037_v12 = vpop.f32.mrb[2].mxu1 }
 0x123   : > { %v1501_v13 = vpop.f32.mrb[3].mxu0  ;;  %v1757_v14 = vpop.f32.mrb[3].mxu1  ;;  %v1510_v19 = vadd.f32 %v2973_v11, %v3651_v3  ;;  %v1766_v20 = vadd.f32 %v3037_v12, %v3651_v3  ;;  %v2075_v21 = vmax.f32 %v1763_v8, 0.0  ;;  %v2011_v25 = vmax.f32 %v1507_v15, 0.0 }
 0x124   : > { %v2073_v16 = vmax.f32 %v1755_v10, 0.0  ;;  %v1502_v17 = vadd.f32 %v3651_v3, %v1501_v13  ;;  %v1758_v18 = vadd.f32 %v3651_v3, %v1757_v14  ;;  %v2009_v22 = vmax.f32 %v1499_v9, 0.0 }
 0x125   : > { %v2012_v30 = vmax.f32 %v1510_v19, 0.0  ;;  %v2076_v31 = vmax.f32 %v1766_v20, 0.0 }
 0x126   : > { %v2010_v23 = vmax.f32 %v1502_v17, 0.0  ;;  %v2074_v24 = vmax.f32 %v1758_v18, 0.0 }
 0x128   : > { %v2138_v26 = vadd.f32 %v2010_v23, %v2009_v22  ;;  %v2222_v27 = vadd.f32 %v2074_v24, %v2073_v16  ;;  %v2976_v28 = vpop.f32.mrb[4].mxu0  ;;  %v3040_v29 = vpop.f32.mrb[4].mxu1 }
 0x129   : > { %v1779_v32 = vadd.f32 %v3040_v29, %v3651_v3  ;;  %v1514_v33 = vpop.f32.mrb[5].mxu0  ;;  %v1770_v34 = vpop.f32.mrb[5].mxu1  ;;  %v1523_v47 = vadd.f32 %v2976_v28, %v3651_v3 }
 0x12a   : > { %v2139_v35 = vadd.f32 %v2138_v26, %v2011_v25  ;;  %v2223_v36 = vadd.f32 %v2222_v27, %v2075_v21  ;;  %v1515_v37 = vadd.f32 %v3651_v3, %v1514_v33  ;;  %v1771_v38 = vadd.f32 %v3651_v3, %v1770_v34  ;;  %v2977_v39 = vpop.f32.mrb[6].mxu0  ;;  %v3041_v40 = vpop.f32.mrb[6].mxu1 }
 0x12b   : > { %v1517_v41 = vpop.f32.mrb[7].mxu0  ;;  %v1773_v42 = vpop.f32.mrb[7].mxu1  ;;  %v2079_v50 = vmax.f32 %v1779_v32, 0.0  ;;  %v1526_v53 = vadd.f32 %v2977_v39, %v3651_v3  ;;  %v1782_v54 = vadd.f32 %v3041_v40, %v3651_v3  ;;  %v2015_v59 = vmax.f32 %v1523_v47, 0.0 }
 0x12c   : > { %v2013_v43 = vmax.f32 %v1515_v37, 0.0  ;;  %v2140_v44 = vadd.f32 %v2139_v35, %v2012_v30  ;;  %v2077_v45 = vmax.f32 %v1771_v38, 0.0  ;;  %v2224_v46 = vadd.f32 %v2223_v36, %v2076_v31 }
 0x12d   : > { %v1518_v48 = vadd.f32 %v3651_v3, %v1517_v41  ;;  %v1774_v49 = vadd.f32 %v3651_v3, %v1773_v42  ;;  %v2016_v6 = vmax.f32 %v1526_v53, 0.0  ;;  %v2080_v7 = vmax.f32 %v1782_v54, 0.0 }
 0x12e   : > { %v2141_v51 = vadd.f32 %v2140_v44, %v2013_v43  ;;  %v2225_v52 = vadd.f32 %v2224_v46, %v2077_v45 }
 0x12f   : > { %v2014_v55 = vmax.f32 %v1518_v48, 0.0  ;;  %v2078_v56 = vmax.f32 %v1774_v49, 0.0 }
 0x130   : > { %v2980_v57 = vpop.f32.mrb[8].mxu0  ;;  %v3044_v58 = vpop.f32.mrb[8].mxu1 }
 0x131   : > { %v2142_v60 = vadd.f32 %v2141_v51, %v2014_v55  ;;  %v2226_v61 = vadd.f32 %v2225_v52, %v2078_v56  ;;  %v1530_v62 = vpop.f32.mrb[9].mxu0  ;;  %v1786_v63 = vpop.f32.mrb[9].mxu1  ;;  %v1795_v0 = vadd.f32 %v3044_v58, %v3651_v3  ;;  %v1539_v12 = vadd.f32 %v2980_v57, %v3651_v3 }
 0x132   : > { %v1531_v1 = vadd.f32 %v3651_v3, %v1530_v62  ;;  %v1787_v2 = vadd.f32 %v3651_v3, %v1786_v63  ;;  %v2981_v4 = vpop.f32.mrb[10].mxu0  ;;  %v3045_v5 = vpop.f32.mrb[10].mxu1 }
 0x133   : > { %v2143_v8 = vadd.f32 %v2142_v60, %v2015_v59  ;;  %v2227_v9 = vadd.f32 %v2226_v61, %v2079_v50  ;;  %v1533_v10 = vpop.f32.mrb[11].mxu0  ;;  %v1789_v11 = vpop.f32.mrb[11].mxu1  ;;  %v2083_v19 = vmax.f32 %v1795_v0, 0.0  ;;  %v1542_v20 = vadd.f32 %v2981_v4, %v3651_v3 }
 0x134   : > { %v2017_v13 = vmax.f32 %v1531_v1, 0.0  ;;  %v2081_v14 = vmax.f32 %v1787_v2, 0.0  ;;  %v1534_v17 = vadd.f32 %v3651_v3, %v1533_v10  ;;  %v1790_v18 = vadd.f32 %v3651_v3, %v1789_v11 }
 0x135   : > { %v2144_v15 = vadd.f32 %v2143_v8, %v2016_v6  ;;  %v2228_v16 = vadd.f32 %v2227_v9, %v2080_v7  ;;  %v1798_v21 = vadd.f32 %v3045_v5, %v3651_v3  ;;  %v2019_v28 = vmax.f32 %v1539_v12, 0.0 }
 0x136   : > { %v2018_v24 = vmax.f32 %v1534_v17, 0.0  ;;  %v2082_v25 = vmax.f32 %v1790_v18, 0.0  ;;  %v2020_v38 = vmax.f32 %v1542_v20, 0.0 }
 0x137   : > { %v2145_v22 = vadd.f32 %v2144_v15, %v2017_v13  ;;  %v2229_v23 = vadd.f32 %v2228_v16, %v2081_v14  ;;  %v2084_v39 = vmax.f32 %v1798_v21, 0.0 }
 0x138   : > { %v2984_v26 = vpop.f32.mrb[12].mxu0  ;;  %v3048_v27 = vpop.f32.mrb[12].mxu1 }
 0x139   : > { %v2146_v29 = vadd.f32 %v2145_v22, %v2018_v24  ;;  %v2230_v30 = vadd.f32 %v2229_v23, %v2082_v25  ;;  %v1546_v31 = vpop.f32.mrb[13].mxu0  ;;  %v1802_v32 = vpop.f32.mrb[13].mxu1  ;;  %v1811_v33 = vadd.f32 %v3048_v27, %v3651_v3  ;;  %v1555_v44 = vadd.f32 %v2984_v26, %v3651_v3 }
 0x13a   : > { %v1547_v34 = vadd.f32 %v3651_v3, %v1546_v31  ;;  %v1803_v35 = vadd.f32 %v3651_v3, %v1802_v32  ;;  %v2985_v36 = vpop.f32.mrb[14].mxu0  ;;  %v3049_v37 = vpop.f32.mrb[14].mxu1 }
 0x13b   : > { %v2147_v40 = vadd.f32 %v2146_v29, %v2019_v28  ;;  %v2231_v41 = vadd.f32 %v2230_v30, %v2083_v19  ;;  %v1549_v42 = vpop.f32.mrb[15].mxu0  ;;  %v1805_v43 = vpop.f32.mrb[15].mxu1  ;;  %v2087_v51 = vmax.f32 %v1811_v33, 0.0  ;;  %v1558_v52 = vadd.f32 %v2985_v36, %v3651_v3 }
 0x13c   : > { %v2021_v45 = vmax.f32 %v1547_v34, 0.0  ;;  %v2085_v46 = vmax.f32 %v1803_v35, 0.0  ;;  %v1550_v49 = vadd.f32 %v3651_v3, %v1549_v42  ;;  %v1806_v50 = vadd.f32 %v3651_v3, %v1805_v43 }
 0x13d   : > { %v2148_v47 = vadd.f32 %v2147_v40, %v2020_v38  ;;  %v2232_v48 = vadd.f32 %v2231_v41, %v2084_v39  ;;  %v1814_v53 = vadd.f32 %v3049_v37, %v3651_v3  ;;  %v2023_v60 = vmax.f32 %v1555_v44, 0.0 }
 0x13e   : > { %v2022_v56 = vmax.f32 %v1550_v49, 0.0  ;;  %v2086_v57 = vmax.f32 %v1806_v50, 0.0  ;;  %v2024_v7 = vmax.f32 %v1558_v52, 0.0 }
 0x13f   : > { %v2149_v54 = vadd.f32 %v2148_v47, %v2021_v45  ;;  %v2233_v55 = vadd.f32 %v2232_v48, %v2085_v46  ;;  %v2088_v8 = vmax.f32 %v1814_v53, 0.0 }
 0x140   : > { %v2988_v58 = vpop.f32.mrb[16].mxu0  ;;  %v3052_v59 = vpop.f32.mrb[16].mxu1 }
 0x141   : > { %v2150_v61 = vadd.f32 %v2149_v54, %v2022_v56  ;;  %v2234_v62 = vadd.f32 %v2233_v55, %v2086_v57  ;;  %v1562_v63 = vpop.f32.mrb[17].mxu0  ;;  %v1818_v0 = vpop.f32.mrb[17].mxu1  ;;  %v1827_v1 = vadd.f32 %v3052_v59, %v3651_v3  ;;  %v1571_v13 = vadd.f32 %v2988_v58, %v3651_v3 }
 0x142   : > { %v1563_v2 = vadd.f32 %v3651_v3, %v1562_v63  ;;  %v1819_v4 = vadd.f32 %v3651_v3, %v1818_v0  ;;  %v2989_v5 = vpop.f32.mrb[18].mxu0  ;;  %v3053_v6 = vpop.f32.mrb[18].mxu1 }
 0x143   : > { %v2151_v9 = vadd.f32 %v2150_v61, %v2023_v60  ;;  %v2235_v10 = vadd.f32 %v2234_v62, %v2087_v51  ;;  %v1565_v11 = vpop.f32.mrb[19].mxu0  ;;  %v1821_v12 = vpop.f32.mrb[19].mxu1  ;;  %v2091_v19 = vmax.f32 %v1827_v1, 0.0  ;;  %v1574_v21 = vadd.f32 %v2989_v5, %v3651_v3 }
 0x144   : > { %v2089_v14 = vmax.f32 %v1819_v4, 0.0  ;;  %v1566_v17 = vadd.f32 %v3651_v3, %v1565_v11  ;;  %v1822_v18 = vadd.f32 %v3651_v3, %v1821_v12  ;;  %v2025_v20 = vmax.f32 %v1563_v2, 0.0 }
 0x145   : > { %v3689_v15 = vadd.f32 %v2151_v9, %v2024_v7  ;;  %v3691_v16 = vadd.f32 %v2235_v10, %v2088_v8  ;;  %v1830_v22 = vadd.f32 %v3053_v6, %v3651_v3  ;;  %v2027_v27 = vmax.f32 %v1571_v13, 0.0 }
 0x146   : > { %v2026_v23 = vmax.f32 %v1566_v17, 0.0  ;;  %v2090_v24 = vmax.f32 %v1822_v18, 0.0  ;;  %v2028_v36 = vmax.f32 %v1574_v21, 0.0 }
 0x147   : > { %v2092_v37 = vmax.f32 %v1830_v22, 0.0 }
 0x148   : > { %v2992_v25 = vpop.f32.mrb[20].mxu0  ;;  %v3056_v26 = vpop.f32.mrb[20].mxu1  ;;  %v2159_v28 = vadd.f32 %v2026_v23, %v2025_v20  ;;  %v2243_v29 = vadd.f32 %v2090_v24, %v2089_v14 }
 0x149   : > { %v1578_v30 = vpop.f32.mrb[21].mxu0  ;;  %v1834_v31 = vpop.f32.mrb[21].mxu1  ;;  %v1843_v42 = vadd.f32 %v3056_v26, %v3651_v3  ;;  %v1587_v45 = vadd.f32 %v2992_v25, %v3651_v3 }
 0x14a   : > { %v1579_v32 = vadd.f32 %v3651_v3, %v1578_v30  ;;  %v1835_v33 = vadd.f32 %v3651_v3, %v1834_v31  ;;  %v2993_v34 = vpop.f32.mrb[22].mxu0  ;;  %v3057_v35 = vpop.f32.mrb[22].mxu1  ;;  %v2160_v38 = vadd.f32 %v2159_v28, %v2027_v27  ;;  %v2244_v39 = vadd.f32 %v2243_v29, %v2091_v19 }
 0x14b   : > { %v1581_v40 = vpop.f32.mrb[23].mxu0  ;;  %v1837_v41 = vpop.f32.mrb[23].mxu1  ;;  %v1590_v52 = vadd.f32 %v2993_v34, %v3651_v3  ;;  %v1846_v53 = vadd.f32 %v3057_v35, %v3651_v3  ;;  %v2095_v54 = vmax.f32 %v1843_v42, 0.0  ;;  %v2031_v59 = vmax.f32 %v1587_v45, 0.0 }
 0x14c   : > { %v2029_v43 = vmax.f32 %v1579_v32, 0.0  ;;  %v2093_v44 = vmax.f32 %v1835_v33, 0.0  ;;  %v2161_v46 = vadd.f32 %v2160_v38, %v2028_v36  ;;  %v2245_v47 = vadd.f32 %v2244_v39, %v2092_v37 }
 0x14d   : > { %v1582_v48 = vadd.f32 %v3651_v3, %v1581_v40  ;;  %v1838_v49 = vadd.f32 %v3651_v3, %v1837_v41  ;;  %v2032_v5 = vmax.f32 %v1590_v52, 0.0  ;;  %v2096_v6 = vmax.f32 %v1846_v53, 0.0 }
 0x14e   : > { %v2162_v50 = vadd.f32 %v2161_v46, %v2029_v43  ;;  %v2246_v51 = vadd.f32 %v2245_v47, %v2093_v44  ;;  %v2153_v39 = vrot.slane %v3689_v15, 4 }
 0x14f   : > { %v2030_v55 = vmax.f32 %v1582_v48, 0.0  ;;  %v2094_v56 = vmax.f32 %v1838_v49, 0.0 }
 0x150   : > { %v2996_v57 = vpop.f32.mrb[24].mxu0  ;;  %v3060_v58 = vpop.f32.mrb[24].mxu1 }
 0x151   : > { %v1594_v60 = vpop.f32.mrb[25].mxu0  ;;  %v1850_v61 = vpop.f32.mrb[25].mxu1  ;;  %v2163_v62 = vadd.f32 %v2162_v50, %v2030_v55  ;;  %v2247_v63 = vadd.f32 %v2246_v51, %v2094_v56  ;;  %v1859_v7 = vadd.f32 %v3060_v58, %v3651_v3  ;;  %v1603_v14 = vadd.f32 %v2996_v57, %v3651_v3 }
 0x152   : > { %v1595_v0 = vadd.f32 %v3651_v3, %v1594_v60  ;;  %v1851_v1 = vadd.f32 %v3651_v3, %v1850_v61  ;;  %v2997_v2 = vpop.f32.mrb[26].mxu0  ;;  %v3061_v4 = vpop.f32.mrb[26].mxu1 }
 0x153   : > { %v1597_v8 = vpop.f32.mrb[27].mxu0  ;;  %v1853_v9 = vpop.f32.mrb[27].mxu1  ;;  %v2164_v10 = vadd.f32 %v2163_v62, %v2031_v59  ;;  %v2248_v11 = vadd.f32 %v2247_v63, %v2095_v54  ;;  %v1606_v21 = vadd.f32 %v2997_v2, %v3651_v3  ;;  %v1862_v22 = vadd.f32 %v3061_v4, %v3651_v3 }
 0x154   : > { %v2033_v12 = vmax.f32 %v1595_v0, 0.0  ;;  %v2097_v13 = vmax.f32 %v1851_v1, 0.0  ;;  %v1598_v17 = vadd.f32 %v3651_v3, %v1597_v8  ;;  %v1854_v18 = vadd.f32 %v3651_v3, %v1853_v9 }
 0x155   : > { %v2165_v19 = vadd.f32 %v2164_v10, %v2032_v5  ;;  %v2249_v20 = vadd.f32 %v2248_v11, %v2096_v6  ;;  %v2099_v25 = vmax.f32 %v1859_v7, 0.0  ;;  %v2035_v30 = vmax.f32 %v1603_v14, 0.0 }
 0x156   : > { %v2034_v23 = vmax.f32 %v1598_v17, 0.0  ;;  %v2098_v24 = vmax.f32 %v1854_v18, 0.0  ;;  %v2036_v40 = vmax.f32 %v1606_v21, 0.0  ;;  %v2100_v41 = vmax.f32 %v1862_v22, 0.0 }
 0x157   : > { %v2166_v26 = vadd.f32 %v2165_v19, %v2033_v12  ;;  %v2250_v27 = vadd.f32 %v2249_v20, %v2097_v13  ;;  %v2154_v54 = vadd.f32 %v2153_v39, %v3689_v15 }
 0x158   : > { %v3000_v28 = vpop.f32.mrb[28].mxu0  ;;  %v3064_v29 = vpop.f32.mrb[28].mxu1 }
 0x159   : > { %v1610_v31 = vpop.f32.mrb[29].mxu0  ;;  %v1866_v32 = vpop.f32.mrb[29].mxu1  ;;  %v2167_v33 = vadd.f32 %v2166_v26, %v2034_v23  ;;  %v2251_v34 = vadd.f32 %v2250_v27, %v2098_v24  ;;  %v1875_v42 = vadd.f32 %v3064_v29, %v3651_v3  ;;  %v1619_v49 = vadd.f32 %v3000_v28, %v3651_v3 }
 0x15a   : > { %v1611_v35 = vadd.f32 %v3651_v3, %v1610_v31  ;;  %v1867_v36 = vadd.f32 %v3651_v3, %v1866_v32  ;;  %v3001_v37 = vpop.f32.mrb[30].mxu0  ;;  %v3065_v38 = vpop.f32.mrb[30].mxu1  ;;  %v2155_v9 = vrot.slane %v2154_v54, 2 }
 0x15b   : > { %v1613_v43 = vpop.f32.mrb[31].mxu0  ;;  %v1869_v44 = vpop.f32.mrb[31].mxu1  ;;  %v2168_v45 = vadd.f32 %v2167_v33, %v2035_v30  ;;  %v2252_v46 = vadd.f32 %v2251_v34, %v2099_v25  ;;  %v2103_v55 = vmax.f32 %v1875_v42, 0.0  ;;  %v1622_v60 = vadd.f32 %v3001_v37, %v3651_v3 }
 0x15c   : > { %v2037_v47 = vmax.f32 %v1611_v35, 0.0  ;;  %v2101_v48 = vmax.f32 %v1867_v36, 0.0  ;;  %v1614_v50 = vadd.f32 %v3651_v3, %v1613_v43  ;;  %v1870_v51 = vadd.f32 %v3651_v3, %v1869_v44 }
 0x15d   : > { %v2169_v52 = vadd.f32 %v2168_v45, %v2036_v40  ;;  %v2253_v53 = vadd.f32 %v2252_v46, %v2100_v41  ;;  %v1878_v61 = vadd.f32 %v3065_v38, %v3651_v3  ;;  %v2039_v0 = vmax.f32 %v1619_v49, 0.0 }
 0x15e   : > { %v2038_v56 = vmax.f32 %v1614_v50, 0.0  ;;  %v2102_v57 = vmax.f32 %v1870_v51, 0.0  ;;  %v2040_v13 = vmax.f32 %v1622_v60, 0.0  ;;  %v2156_v34 = vadd.f32 %v2155_v9, %v2154_v54 }
 0x15f   : > { %v2170_v58 = vadd.f32 %v2169_v52, %v2037_v47  ;;  %v2254_v59 = vadd.f32 %v2253_v53, %v2101_v48  ;;  %v2104_v14 = vmax.f32 %v1878_v61, 0.0 }
 0x160   : > { %v3004_v62 = vpop.f32.mrb[32].mxu0  ;;  %v3068_v63 = vpop.f32.mrb[32].mxu1 }
 0x161   : > { %v1626_v1 = vpop.f32.mrb[33].mxu0  ;;  %v1882_v2 = vpop.f32.mrb[33].mxu1  ;;  %v2171_v4 = vadd.f32 %v2170_v58, %v2038_v56  ;;  %v2255_v5 = vadd.f32 %v2254_v59, %v2102_v57  ;;  %v1891_v6 = vadd.f32 %v3068_v63, %v3651_v3  ;;  %v1635_v19 = vadd.f32 %v3004_v62, %v3651_v3 }
 0x162   : > { %v1883_v15 = vadd.f32 %v3651_v3, %v1882_v2  ;;  %v3005_v7 = vpop.f32.mrb[34].mxu0  ;;  %v3069_v8 = vpop.f32.mrb[34].mxu1  ;;  %v1627_v10 = vadd.f32 %v3651_v3, %v1626_v1 }
 0x163   : > { %v1629_v11 = vpop.f32.mrb[35].mxu0  ;;  %v1885_v12 = vpop.f32.mrb[35].mxu1  ;;  %v2172_v17 = vadd.f32 %v2171_v4, %v2039_v0  ;;  %v2256_v18 = vadd.f32 %v2255_v5, %v2103_v55  ;;  %v2107_v25 = vmax.f32 %v1891_v6, 0.0  ;;  %v1638_v26 = vadd.f32 %v3005_v7, %v3651_v3 }
 0x164   : > { %v2105_v20 = vmax.f32 %v1883_v15, 0.0  ;;  %v1630_v21 = vadd.f32 %v3651_v3, %v1629_v11  ;;  %v1886_v22 = vadd.f32 %v3651_v3, %v1885_v12  ;;  %v2041_v27 = vmax.f32 %v1627_v10, 0.0 }
 0x165   : > { %v2173_v23 = vadd.f32 %v2172_v17, %v2040_v13  ;;  %v3729_v24 = vadd.f32 %v2256_v18, %v2104_v14  ;;  %v1894_v28 = vadd.f32 %v3069_v8, %v3651_v3  ;;  %v2043_v35 = vmax.f32 %v1635_v19, 0.0 }
 0x166   : > { %v2042_v29 = vmax.f32 %v1630_v21, 0.0  ;;  %v2106_v30 = vmax.f32 %v1886_v22, 0.0  ;;  %v2044_v45 = vmax.f32 %v1638_v26, 0.0  ;;  %v2157_v55 = vrot.slane %v2156_v34, 1 }
 0x167   : > { %v2174_v31 = vrot.slane %v2173_v23, 4  ;;  %v2108_v46 = vmax.f32 %v1894_v28, 0.0 }
 0x168   : > { %v3008_v32 = vpop.f32.mrb[36].mxu0  ;;  %v3072_v33 = vpop.f32.mrb[36].mxu1  ;;  %v2180_v36 = vadd.f32 %v2042_v29, %v2041_v27  ;;  %v2264_v37 = vadd.f32 %v2106_v30, %v2105_v20  ;;  %v2158_v8 = vadd.f32 %v2157_v55, %v2156_v34 }
 0x169   : > { %v1642_v38 = vpop.f32.mrb[37].mxu0  ;;  %v1898_v39 = vpop.f32.mrb[37].mxu1  ;;  %v2175_v40 = vadd.f32 %v2174_v31, %v2173_v23  ;;  %v1907_v52 = vadd.f32 %v3072_v33, %v3651_v3  ;;  %v1651_v59 = vadd.f32 %v3008_v32, %v3651_v3 }
 0x16a   : > { %v1643_v41 = vadd.f32 %v3651_v3, %v1642_v38  ;;  %v1899_v42 = vadd.f32 %v3651_v3, %v1898_v39  ;;  %v3009_v43 = vpop.f32.mrb[38].mxu0  ;;  %v3073_v44 = vpop.f32.mrb[38].mxu1  ;;  %v2181_v47 = vadd.f32 %v2180_v36, %v2043_v35  ;;  %v2265_v48 = vadd.f32 %v2264_v37, %v2107_v25 }
 0x16b   : > { %v1645_v49 = vpop.f32.mrb[39].mxu0  ;;  %v1901_v50 = vpop.f32.mrb[39].mxu1  ;;  %v2176_v51 = vrot.slane %v2175_v40, 2  ;;  %v1654_v0 = vadd.f32 %v3009_v43, %v3651_v3  ;;  %v1910_v1 = vadd.f32 %v3073_v44, %v3651_v3  ;;  %v2111_v4 = vmax.f32 %v1907_v52, 0.0 }
 0x16c   : > { %v2045_v53 = vmax.f32 %v1643_v41, 0.0  ;;  %v2109_v54 = vmax.f32 %v1899_v42, 0.0  ;;  %v2182_v56 = vadd.f32 %v2181_v47, %v2044_v45  ;;  %v2266_v57 = vadd.f32 %v2265_v48, %v2108_v46 }
 0x16d   : > { %v2177_v58 = vadd.f32 %v2176_v51, %v2175_v40  ;;  %v1646_v60 = vadd.f32 %v3651_v3, %v1645_v49  ;;  %v1902_v61 = vadd.f32 %v3651_v3, %v1901_v50  ;;  %v2047_v12 = vmax.f32 %v1651_v59, 0.0 }
 0x16e   : > { %v2183_v62 = vadd.f32 %v2182_v56, %v2045_v53  ;;  %v2267_v63 = vadd.f32 %v2266_v57, %v2109_v54  ;;  %v2048_v19 = vmax.f32 %v1654_v0, 0.0  ;;  %v2112_v20 = vmax.f32 %v1910_v1, 0.0 }
 0x16f   : > { %v2178_v2 = vrot.slane %v2177_v58, 1  ;;  %v2046_v5 = vmax.f32 %v1646_v60, 0.0  ;;  %v2110_v6 = vmax.f32 %v1902_v61, 0.0 }
 0x170   : > { %v3012_v15 = vpop.f32.mrb[40].mxu0  ;;  %v3076_v7 = vpop.f32.mrb[40].mxu1 }
 0x171   : > { %v1658_v9 = vpop.f32.mrb[41].mxu0  ;;  %v1914_v10 = vpop.f32.mrb[41].mxu1  ;;  %v2179_v11 = vadd.f32 %v2178_v2, %v2177_v58  ;;  %v2184_v13 = vadd.f32 %v2183_v62, %v2046_v5  ;;  %v2268_v14 = vadd.f32 %v2267_v63, %v2110_v6  ;;  %v1923_v29 = vadd.f32 %v3076_v7, %v3651_v3 }
 0x172   : > { %v3013_v17 = vpop.f32.mrb[42].mxu0  ;;  %v3077_v18 = vpop.f32.mrb[42].mxu1  ;;  %v1659_v21 = vadd.f32 %v3651_v3, %v1658_v9  ;;  %v1915_v22 = vadd.f32 %v3651_v3, %v1914_v10  ;;  %v1667_v30 = vadd.f32 %v3012_v15, %v3651_v3 }
 0x173   : > { %v1661_v23 = vpop.f32.mrb[43].mxu0  ;;  %v1917_v25 = vpop.f32.mrb[43].mxu1  ;;  %v3743_v26 = vsel %vm2314_vm1, %v2179_v11, %v2158_v8  ;;  %v2185_v27 = vadd.f32 %v2184_v13, %v2047_v12  ;;  %v2269_v28 = vadd.f32 %v2268_v14, %v2111_v4  ;;  %v1670_v37 = vadd.f32 %v3013_v17, %v3651_v3 }
 0x174   : > { %v2049_v31 = vmax.f32 %v1659_v21, 0.0  ;;  %v2113_v32 = vmax.f32 %v1915_v22, 0.0  ;;  %v1662_v33 = vadd.f32 %v3651_v3, %v1661_v23  ;;  %v1918_v36 = vadd.f32 %v3651_v3, %v1917_v25 }
 0x175   : > { %v2186_v34 = vadd.f32 %v2185_v27, %v2048_v19  ;;  %v2270_v35 = vadd.f32 %v2269_v28, %v2112_v20  ;;  %v1926_v38 = vadd.f32 %v3077_v18, %v3651_v3  ;;  %v2115_v40 = vmax.f32 %v1923_v29, 0.0 }
 0x176   : > { %v2050_v39 = vmax.f32 %v1662_v33, 0.0  ;;  %v2114_v43 = vmax.f32 %v1918_v36, 0.0  ;;  %v2051_v46 = vmax.f32 %v1667_v30, 0.0  ;;  %v2052_v55 = vmax.f32 %v1670_v37, 0.0 }
 0x177   : > { %v2187_v41 = vadd.f32 %v2186_v34, %v2049_v31  ;;  %v2271_v42 = vadd.f32 %v2270_v35, %v2113_v32  ;;  %v2116_v56 = vmax.f32 %v1926_v38, 0.0 }
 0x178   : > { %v3016_v44 = vpop.f32.mrb[44].mxu0  ;;  %v3080_v45 = vpop.f32.mrb[44].mxu1 }
 0x179   : > { %v1674_v47 = vpop.f32.mrb[45].mxu0  ;;  %v1930_v48 = vpop.f32.mrb[45].mxu1  ;;  %v2188_v49 = vadd.f32 %v2187_v41, %v2050_v39  ;;  %v2272_v50 = vadd.f32 %v2271_v42, %v2114_v43  ;;  %v1939_v57 = vadd.f32 %v3080_v45, %v3651_v3  ;;  %v1683_v0 = vadd.f32 %v3016_v44, %v3651_v3 }
 0x17a   : > { %v1675_v51 = vadd.f32 %v3651_v3, %v1674_v47  ;;  %v1931_v52 = vadd.f32 %v3651_v3, %v1930_v48  ;;  %v3017_v53 = vpop.f32.mrb[46].mxu0  ;;  %v3081_v54 = vpop.f32.mrb[46].mxu1 }
 0x17b   : > { %v1677_v58 = vpop.f32.mrb[47].mxu0  ;;  %v1933_v59 = vpop.f32.mrb[47].mxu1  ;;  %v2189_v60 = vadd.f32 %v2188_v49, %v2051_v46  ;;  %v2273_v61 = vadd.f32 %v2272_v50, %v2115_v40  ;;  %v2119_v6 = vmax.f32 %v1939_v57, 0.0  ;;  %v1686_v10 = vadd.f32 %v3017_v53, %v3651_v3 }
 0x17c   : > { %v2053_v62 = vmax.f32 %v1675_v51, 0.0  ;;  %v2117_v63 = vmax.f32 %v1931_v52, 0.0  ;;  %v1678_v1 = vadd.f32 %v3651_v3, %v1677_v58  ;;  %v1934_v2 = vadd.f32 %v3651_v3, %v1933_v59 }
 0x17d   : > { %v2190_v4 = vadd.f32 %v2189_v60, %v2052_v55  ;;  %v2274_v5 = vadd.f32 %v2273_v61, %v2116_v56  ;;  %v1942_v11 = vadd.f32 %v3081_v54, %v3651_v3  ;;  %v2055_v14 = vmax.f32 %v1683_v0, 0.0 }
 0x17e   : > { %v2054_v15 = vmax.f32 %v1678_v1, 0.0  ;;  %v2118_v7 = vmax.f32 %v1934_v2, 0.0  ;;  %v2056_v30 = vmax.f32 %v1686_v10, 0.0 }
 0x17f   : > { %v2191_v8 = vadd.f32 %v2190_v4, %v2053_v62  ;;  %v2275_v9 = vadd.f32 %v2274_v5, %v2117_v63  ;;  %v2120_v31 = vmax.f32 %v1942_v11, 0.0 }
 0x180   : > { %v3020_v12 = vpop.f32.mrb[48].mxu0  ;;  %v3084_v13 = vpop.f32.mrb[48].mxu1 }
 0x181   : > { %v1690_v17 = vpop.f32.mrb[49].mxu0  ;;  %v1946_v18 = vpop.f32.mrb[49].mxu1  ;;  %v2192_v19 = vadd.f32 %v2191_v8, %v2054_v15  ;;  %v2276_v20 = vadd.f32 %v2275_v9, %v2118_v7  ;;  %v1955_v21 = vadd.f32 %v3084_v13, %v3651_v3  ;;  %v1699_v34 = vadd.f32 %v3020_v12, %v3651_v3 }
 0x182   : > { %v1947_v22 = vadd.f32 %v3651_v3, %v1946_v18  ;;  %v3021_v23 = vpop.f32.mrb[50].mxu0  ;;  %v3085_v25 = vpop.f32.mrb[50].mxu1  ;;  %v1691_v27 = vadd.f32 %v3651_v3, %v1690_v17 }
 0x183   : > { %v1693_v28 = vpop.f32.mrb[51].mxu0  ;;  %v1949_v29 = vpop.f32.mrb[51].mxu1  ;;  %v2193_v32 = vadd.f32 %v2192_v19, %v2055_v14  ;;  %v2277_v33 = vadd.f32 %v2276_v20, %v2119_v6  ;;  %v2123_v40 = vmax.f32 %v1955_v21, 0.0  ;;  %v1702_v41 = vadd.f32 %v3021_v23, %v3651_v3 }
 0x184   : > { %v2121_v35 = vmax.f32 %v1947_v22, 0.0  ;;  %v1694_v36 = vadd.f32 %v3651_v3, %v1693_v28  ;;  %v1950_v37 = vadd.f32 %v3651_v3, %v1949_v29  ;;  %v2057_v42 = vmax.f32 %v1691_v27, 0.0 }
 0x185   : > { %v2194_v38 = vadd.f32 %v2193_v32, %v2056_v30  ;;  %v3765_v39 = vadd.f32 %v2277_v33, %v2120_v31  ;;  %v1958_v43 = vadd.f32 %v3085_v25, %v3651_v3  ;;  %v2059_v49 = vmax.f32 %v1699_v34, 0.0 }
 0x186   : > { %v2058_v44 = vmax.f32 %v1694_v36, 0.0  ;;  %v2122_v45 = vmax.f32 %v1950_v37, 0.0  ;;  %v2060_v59 = vmax.f32 %v1702_v41, 0.0 }
 0x187   : > { %v2195_v46 = vrot.slane %v2194_v38, 4  ;;  %v2124_v60 = vmax.f32 %v1958_v43, 0.0 }
 0x188   : > { %v3024_v47 = vpop.f32.mrb[52].mxu0  ;;  %v3088_v48 = vpop.f32.mrb[52].mxu1  ;;  %v2201_v50 = vadd.f32 %v2058_v44, %v2057_v42  ;;  %v2285_v51 = vadd.f32 %v2122_v45, %v2121_v35 }
 0x189   : > { %v1706_v52 = vpop.f32.mrb[53].mxu0  ;;  %v1962_v53 = vpop.f32.mrb[53].mxu1  ;;  %v2196_v54 = vadd.f32 %v2195_v46, %v2194_v38  ;;  %v1971_v2 = vadd.f32 %v3088_v48, %v3651_v3  ;;  %v1715_v8 = vadd.f32 %v3024_v47, %v3651_v3 }
 0x18a   : > { %v1707_v55 = vadd.f32 %v3651_v3, %v1706_v52  ;;  %v1963_v56 = vadd.f32 %v3651_v3, %v1962_v53  ;;  %v3025_v57 = vpop.f32.mrb[54].mxu0  ;;  %v3089_v58 = vpop.f32.mrb[54].mxu1  ;;  %v2202_v61 = vadd.f32 %v2201_v50, %v2059_v49  ;;  %v2286_v62 = vadd.f32 %v2285_v51, %v2123_v40 }
 0x18b   : > { %v1709_v63 = vpop.f32.mrb[55].mxu0  ;;  %v1965_v0 = vpop.f32.mrb[55].mxu1  ;;  %v2197_v1 = vrot.slane %v2196_v54, 2  ;;  %v1718_v13 = vadd.f32 %v3025_v57, %v3651_v3  ;;  %v1974_v14 = vadd.f32 %v3089_v58, %v3651_v3  ;;  %v2127_v18 = vmax.f32 %v1971_v2, 0.0 }
 0x18c   : > { %v2061_v4 = vmax.f32 %v1707_v55, 0.0  ;;  %v2125_v5 = vmax.f32 %v1963_v56, 0.0  ;;  %v2203_v6 = vadd.f32 %v2202_v61, %v2060_v59  ;;  %v2287_v15 = vadd.f32 %v2286_v62, %v2124_v60 }
 0x18d   : > { %v2198_v7 = vadd.f32 %v2197_v1, %v2196_v54  ;;  %v1710_v9 = vadd.f32 %v3651_v3, %v1709_v63  ;;  %v1966_v10 = vadd.f32 %v3651_v3, %v1965_v0  ;;  %v2063_v28 = vmax.f32 %v1715_v8, 0.0 }
 0x18e   : > { %v2204_v11 = vadd.f32 %v2203_v6, %v2061_v4  ;;  %v2288_v12 = vadd.f32 %v2287_v15, %v2125_v5  ;;  %v2064_v33 = vmax.f32 %v1718_v13, 0.0  ;;  %v2128_v34 = vmax.f32 %v1974_v14, 0.0 }
 0x18f   : > { %v2199_v17 = vrot.slane %v2198_v7, 1  ;;  %v2062_v19 = vmax.f32 %v1710_v9, 0.0  ;;  %v2126_v20 = vmax.f32 %v1966_v10, 0.0 }
 0x190   : > { %v3028_v21 = vpop.f32.mrb[56].mxu0  ;;  %v3092_v22 = vpop.f32.mrb[56].mxu1 }
 0x191   : > { %v1722_v23 = vpop.f32.mrb[57].mxu0  ;;  %v1978_v25 = vpop.f32.mrb[57].mxu1  ;;  %v2200_v27 = vadd.f32 %v2199_v17, %v2198_v7  ;;  %v2205_v29 = vadd.f32 %v2204_v11, %v2062_v19  ;;  %v2289_v30 = vadd.f32 %v2288_v12, %v2126_v20  ;;  %v1987_v43 = vadd.f32 %v3092_v22, %v3651_v3 }
 0x192   : > { %v3029_v31 = vpop.f32.mrb[58].mxu0  ;;  %v3093_v32 = vpop.f32.mrb[58].mxu1  ;;  %v1723_v35 = vadd.f32 %v3651_v3, %v1722_v23  ;;  %v1979_v36 = vadd.f32 %v3651_v3, %v1978_v25  ;;  %v1731_v44 = vadd.f32 %v3028_v21, %v3651_v3  ;;  %v2237_v17 = vrot.slane %v3691_v16, 4 }
 0x193   : > { %v1725_v37 = vpop.f32.mrb[59].mxu0  ;;  %v1981_v38 = vpop.f32.mrb[59].mxu1  ;;  %v3780_v40 = vsel %vm2316_vm2, %v2200_v27, %v3743_v26  ;;  %v2206_v41 = vadd.f32 %v2205_v29, %v2063_v28  ;;  %v2290_v42 = vadd.f32 %v2289_v30, %v2127_v18  ;;  %v1734_v51 = vadd.f32 %v3029_v31, %v3651_v3  ;;  %v3210_v29 = vld [vmem:[%s3933_s2] ss:$0 sm:$0xff] }
 0x194   : > { %v2065_v45 = vmax.f32 %v1723_v35, 0.0  ;;  %v2129_v46 = vmax.f32 %v1979_v36, 0.0  ;;  %v1726_v47 = vadd.f32 %v3651_v3, %v1725_v37  ;;  %v1982_v50 = vadd.f32 %v3651_v3, %v1981_v38 }
 0x195   : > { %v2207_v48 = vadd.f32 %v2206_v41, %v2064_v33  ;;  %v2291_v49 = vadd.f32 %v2290_v42, %v2128_v34  ;;  %v1990_v52 = vadd.f32 %v3093_v32, %v3651_v3  ;;  %v2131_v53 = vmax.f32 %v1987_v43, 0.0 }
 0x196   : > { %v2066_v26 = vmax.f32 %v1726_v47, 0.0  ;;  %v2130_v56 = vmax.f32 %v1982_v50, 0.0  ;;  %v2067_v59 = vmax.f32 %v1731_v44, 0.0  ;;  %v2068_v5 = vmax.f32 %v1734_v51, 0.0 }
 0x197   : > { %v2208_v54 = vadd.f32 %v2207_v48, %v2065_v45  ;;  %v2292_v55 = vadd.f32 %v2291_v49, %v2129_v46  ;;  %v2132_v6 = vmax.f32 %v1990_v52, 0.0  ;;  %v2258_v21 = vrot.slane %v3729_v24, 4 }
 0x198   : > { %v3032_v57 = vpop.f32.mrb[60].mxu0  ;;  %v3096_v58 = vpop.f32.mrb[60].mxu1  ;;  %v2279_v32 = vrot.slane %v3765_v39, 4  ;;  %v2238_v35 = vadd.f32 %v2237_v17, %v3691_v16  ;;  %v3221_v17 = vld [vmem:[%s3934_s3 + $0x20] ss:$16 sps:$4 sm:$0xff] (!%p2863_p10)  }
 0x199   : > { %v1738_v60 = vpop.f32.mrb[61].mxu0  ;;  %v1994_v61 = vpop.f32.mrb[61].mxu1  ;;  %v2209_v62 = vadd.f32 %v2208_v54, %v2066_v26  ;;  %v2293_v63 = vadd.f32 %v2292_v55, %v2130_v56  ;;  %v2003_v15 = vadd.f32 %v3096_v58, %v3651_v3  ;;  %v1747_v18 = vadd.f32 %v3032_v57, %v3651_v3 }
 0x19a   : > { %v1739_v0 = vadd.f32 %v3651_v3, %v1738_v60  ;;  %v1995_v1 = vadd.f32 %v3651_v3, %v1994_v61  ;;  %v3033_v2 = vpop.f32.mrb[62].mxu0  ;;  %v3097_v4 = vpop.f32.mrb[62].mxu1  ;;  %v2259_v36 = vadd.f32 %v2258_v21, %v3729_v24  ;;  %v2280_v43 = vadd.f32 %v2279_v32, %v3765_v39  ;;  %v3227_v21 = vld [vmem:[%s3934_s3 + $0x40] ss:$16 sps:$4 sm:$0xff] (!%p2863_p10)   ;;  %v3240_v32 = vld [vmem:[%s3934_s3 + $0x88] ss:$16 sps:$4 sm:$0xff] (!%p2863_p10)  }
 0x19b   : > { %v1741_v7 = vpop.f32.mrb[63].mxu0  ;;  %v1997_v8 = vpop.f32.mrb[63].mxu1  ;;  %v2210_v9 = vadd.f32 %v2209_v62, %v2067_v59  ;;  %v2294_v10 = vadd.f32 %v2293_v63, %v2131_v53  ;;  %v2135_v22 = vmax.f32 %v2003_v15, 0.0  ;;  %v1750_v30 = vadd.f32 %v3210_v29, %v3033_v2 }
 0x19c   : > { %v2069_v11 = vmax.f32 %v1739_v0, 0.0  ;;  %v2133_v12 = vmax.f32 %v1995_v1, 0.0  ;;  %v1742_v13 = vadd.f32 %v3651_v3, %v1741_v7  ;;  %v1998_v14 = vadd.f32 %v3651_v3, %v1997_v8 }
 0x19d   : > { %v2211_v19 = vadd.f32 %v2210_v9, %v2068_v5  ;;  %v2295_v20 = vadd.f32 %v2294_v10, %v2132_v6  ;;  %v2006_v31 = vadd.f32 %v3210_v29, %v3097_v4  ;;  %v2071_v33 = vmax.f32 %v1747_v18, 0.0  ;;  %v2137_v4 = vld [vmem:[#allocation2] sm:$0xff]  ;;  %v3222_v18 = vld [vmem:[%s3934_s3 + $0x28] ss:$16 sps:$4 sm:$0xff] (!%p2863_p10)  }
 0x19e   : > { %v2070_v23 = vmax.f32 %v1742_v13, 0.0  ;;  %v2134_v25 = vmax.f32 %v1998_v14, 0.0  ;;  %v2072_v37 = vmax.f32 %v1750_v30, 0.0  ;;  %v2239_v46 = vrot.slane %v2238_v35, 2  ;;  %v3211_v9 = vld [vmem:[%s3934_s3 + $0x4] ss:$16 sps:$4 sm:$0xff] (!%p2863_p10)  }
 0x19f   : > { %v2212_v27 = vadd.f32 %v2211_v19, %v2069_v11  ;;  %v2296_v28 = vadd.f32 %v2295_v20, %v2133_v12  ;;  %v2136_v38 = vmax.f32 %v2006_v31, 0.0  ;;  %v2260_v47 = vrot.slane %v2259_v36, 2  ;;  %2552 = vmatprep.subr.bf16.mxu0 (!%p2863_p10), %v3211_v9  ;;  %v3215_v11 = vld [vmem:[%s3934_s3] ss:$16 sps:$4 sm:$0xff] (!%p2863_p10)   ;;  %v3216_v12 = vld [vmem:[%s3934_s3 + $0x8] ss:$16 sps:$4 sm:$0xff] (!%p2863_p10)  }
 0x1a0   : > { %v2281_v50 = vrot.slane %v2280_v43, 2  ;;  %v2240_v26 = vadd.f32 %v2239_v46, %v2238_v35  ;;  %v3302_v10 = vmov (!%p2863_p10), 0   ;;  %v3217_v13 = vld [vmem:[%s3934_s3 + $0x24] ss:$16 sps:$4 sm:$0xff] (!%p2863_p10)   ;;  %2553 = vmatpush1.bf16.msra.mxu0 (!%p2863_p10), %v3215_v11  ;;  %v3219_v14 = vld [vmem:[%s3934_s3 + $0x2c] ss:$16 sps:$4 sm:$0xff] (!%p2863_p10)  }
 0x1a1   : > { %v2213_v34 = vadd.f32 %v2212_v27, %v2070_v23  ;;  %v2297_v3 = vadd.f32 %v2296_v28, %v2134_v25  ;;  %v2261_v53 = vadd.f32 %v2260_v47, %v2259_v36  ;;  %2584 = vmatprep.mubr.bf16.mxu0 (!%p2863_p10), %v3302_v10  ;;  %2625 = vmatprep.mubr.bf16.mxu1 (!%p2863_p10), %v3302_v10  ;;  %v3223_v19 = vld [vmem:[%s3934_s3 + $0x44] ss:$16 sps:$4 sm:$0xff] (!%p2863_p10)   ;;  %v3225_v20 = vld [vmem:[%s3934_s3 + $0x4c] ss:$16 sps:$4 sm:$0xff] (!%p2863_p10)   ;;  %v3233_v27 = vld [vmem:[%s3934_s3 + $0x60] ss:$16 sps:$4 sm:$0xff] (!%p2863_p10)  }
 0x1a2   : > { %v2282_v24 = vadd.f32 %v2281_v50, %v2280_v43  ;;  %v2241_v57 = vrot.slane %v2240_v26, 1  ;;  %2554 = vmatprep.subr.bf16.mxu0 (!%p2863_p10), %v3217_v13  ;;  %v3229_v23 = vld [vmem:[%s3934_s3 + $0x64] ss:$16 sps:$4 sm:$0xff] (!%p2863_p10)   ;;  %v3231_v25 = vld [vmem:[%s3934_s3 + $0x6c] ss:$16 sps:$4 sm:$0xff] (!%p2863_p10)  }
 0x1a3   : > { %v2214_v41 = vadd.f32 %v2213_v34, %v2071_v33  ;;  %v2298_v42 = vadd.f32 %v2297_v3, %v2135_v22  ;;  %v2262_v58 = vrot.slane %v2261_v53, 1  ;;  %v3228_v22 = vld [vmem:[%s3934_s3 + $0x48] ss:$16 sps:$4 sm:$0xff] (!%p2863_p10)   ;;  %v3235_v29 = vld [vmem:[%s3934_s3 + $0x84] ss:$16 sps:$4 sm:$0xff] (!%p2863_p10)  }
 0x1a4   : > { %v2283_v39 = vrot.slane %v2282_v24, 1  ;;  %v2242_v62 = vadd.f32 %v2241_v57, %v2240_v26  ;;  %2555 = vmatpush1.bf16.msra.mxu0 (!%p2863_p10), %v3221_v17  ;;  %v3234_v28 = vld [vmem:[%s3934_s3 + $0x68] ss:$16 sps:$4 sm:$0xff] (!%p2863_p10)   ;;  %v3237_v30 = vld [vmem:[%s3934_s3 + $0x8c] ss:$16 sps:$4 sm:$0xff] (!%p2863_p10)  }
 0x1a5   : > { %v2215_v44 = vadd.f32 %v2214_v41, %v2072_v37  ;;  %v2299_v45 = vadd.f32 %v2298_v42, %v2136_v38  ;;  %v2263_v63 = vadd.f32 %v2262_v58, %v2261_v53  ;;  %2556 = vmatprep.subr.bf16.mxu0 (!%p2863_p10), %v3223_v19  ;;  %v3239_v31 = vld [vmem:[%s3934_s3 + $0x80] ss:$16 sps:$4 sm:$0xff] (!%p2863_p10)   ;;  %v3241_v33 = vld [vmem:[%s3934_s3 + $0xa4] ss:$16 sps:$4 sm:$0xff] (!%p2863_p10)   ;;  %v3243_v34 = vld [vmem:[%s3934_s3 + $0xac] ss:$16 sps:$4 sm:$0xff] (!%p2863_p10)  }
 0x1a6   : > { %v2284_v1 = vadd.f32 %v2283_v39, %v2282_v24  ;;  %v3245_v3 = vld [vmem:[%s3934_s3 + $0xa0] ss:$16 sps:$4 sm:$0xff] (!%p2863_p10)   ;;  %v3246_v35 = vld [vmem:[%s3934_s3 + $0xa8] ss:$16 sps:$4 sm:$0xff] (!%p2863_p10)   ;;  %v3247_v36 = vld [vmem:[%s3934_s3 + $0xc4] ss:$16 sps:$4 sm:$0xff] (!%p2863_p10)  }
 0x1a7   : > { %v2216_v48 = vrot.slane %v2215_v44, 4  ;;  %v2300_v49 = vrot.slane %v2299_v45, 4  ;;  %v3249_v37 = vld [vmem:[%s3934_s3 + $0xcc] ss:$16 sps:$4 sm:$0xff] (!%p2863_p10)   ;;  %v3251_v38 = vld [vmem:[%s3934_s3 + $0xc0] ss:$16 sps:$4 sm:$0xff] (!%p2863_p10)  }
 0x1a8   : > { %2557 = vmatpush1.bf16.msra.mxu0 (!%p2863_p10), %v3227_v21  ;;  %v3252_v41 = vld [vmem:[%s3934_s3 + $0xc8] ss:$16 sps:$4 sm:$0xff] (!%p2863_p10)   ;;  %v3253_v43 = vld [vmem:[%s3934_s3 + $0xe4] ss:$16 sps:$4 sm:$0xff] (!%p2863_p10)   ;;  %v3257_v46 = vld [vmem:[%s3934_s3 + $0xe0] ss:$16 sps:$4 sm:$0xff] (!%p2863_p10)  }
 0x1a9   : > { %v2217_v51 = vadd.f32 %v2216_v48, %v2215_v44  ;;  %v2301_v52 = vadd.f32 %v2300_v49, %v2299_v45  ;;  %2558 = vmatprep.subr.bf16.mxu0 (!%p2863_p10), %v3229_v23  ;;  %v3255_v44 = vld [vmem:[%s3934_s3 + $0xec] ss:$16 sps:$4 sm:$0xff] (!%p2863_p10)   ;;  %v3258_v47 = vld [vmem:[%s3934_s3 + $0xe8] ss:$16 sps:$4 sm:$0xff] (!%p2863_p10)   ;;  %v2372_v49 = vlaneseq (!%p2863_p10)  ;;  %v2370_v26 = vld [vmem:[%s3935_s4] sm:$0xf] (!%p2863_p10) }
 0x1ab   : > { %v2218_v16 = vrot.slane %v2217_v51, 2  ;;  %v2302_v54 = vrot.slane %v2301_v52, 2  ;;  %v2373_v50 = vshrl.u32 (!%p2863_p10), %v2372_v49, 7 }
 0x1ac   : > { %2559 = vmatpush1.bf16.msra.mxu0 (!%p2863_p10), %v3233_v27 }
 0x1ad   : > { %v2219_v55 = vadd.f32 %v2218_v16, %v2217_v51  ;;  %v2303_v56 = vadd.f32 %v2302_v54, %v2301_v52  ;;  %2560 = vmatprep.subr.bf16.mxu0 (!%p2863_p10), %v3235_v29  ;;  %v2374_v51 = vsub.s32 (!%p2863_p10), 0, %v2373_v50  ;;  %v2382_v52 = vsub.s32 (!%p2863_p10), 2, %v2373_v50 }
 0x1ae   : > { %v2378_v53 = vsub.s32 (!%p2863_p10), 1, %v2373_v50  ;;  %v2386_v16 = vsub.s32 (!%p2863_p10), 3, %v2373_v50 }
 0x1af   : > { %v2220_v59 = vrot.slane %v2219_v55, 1  ;;  %v2304_v61 = vrot.slane %v2303_v56, 1  ;;  %v2375_v54 = vrot.slane (!%p2863_p10), %v2370_v26, %v2374_v51  ;;  %v2383_v24 = vrot.slane (!%p2863_p10), %v2370_v26, %v2382_v52 }
 0x1b0   : > { %2561 = vmatpush1.bf16.msra.mxu0 (!%p2863_p10), %v3239_v31  ;;  %v2387_v58 = vrot.slane (!%p2863_p10), %v2370_v26, %v2386_v16 }
 0x1b1   : > { %v2221_v60 = vadd.f32 %v2220_v59, %v2219_v55  ;;  %v2305_v5 = vadd.f32 %v2304_v61, %v2303_v56  ;;  %2562 = vmatprep.subr.bf16.mxu0 (!%p2863_p10), %v3241_v33  ;;  %v2379_v55 = vrot.slane (!%p2863_p10), %v2370_v26, %v2378_v53 }
 0x1b3   : > { %v2319_v0 = vsel %vm2318_vm3, %v2221_v60, %v3780_v40  ;;  %v3213_v40 = vld [vmem:[%s3934_s3 + $0xc] ss:$16 sps:$4 sm:$0xff] (!%p2863_p10)  }
 0x1b4   : > { %v2321_v2 = vsel %vm2320_vm4, %v2242_v62, %v2319_v0  ;;  %2334 = sbr.rel (%p2863_p10) target bundleno = 847 (0x34f), region = 89  ;;  %2593 = vmatprep.subr.bf16.mxu1 (!%p2863_p10), %v3213_v40  ;;  %2563 = vmatpush1.bf16.msra.mxu0 (!%p2863_p10), %v3245_v3 }
 0x1b5   : > { %v2323_v6 = vsel %vm2322_vm5, %v2263_v63, %v2321_v2  ;;  %2594 = vmatpush1.bf16.msra.mxu1 (!%p2863_p10), %v3216_v12  ;;  %2564 = vmatprep.subr.bf16.mxu0 (!%p2863_p10), %v3247_v36 }
 0x1b6   : > { %v2325_v15 = vsel %vm2324_vm6, %v2284_v1, %v2323_v6  ;;  %2595 = vmatprep.subr.bf16.mxu1 (!%p2863_p10), %v3219_v14 }
 0x1b7   : > { %v2327_v7 = vsel %vm2326_vm7, %v2305_v5, %v2325_v15 }
 0x1b8   : > { %v2329_v8 = vadd.f32 %v2327_v7, %v2137_v4  ;;  %2565 = vmatpush1.bf16.msra.mxu0 (!%p2863_p10), %v3251_v38 }
 0x1b9   : > { %2596 = vmatpush1.bf16.msra.mxu1 (!%p2863_p10), %v3222_v18  ;;  %2566 = vmatprep.subr.bf16.mxu0 (!%p2863_p10), %v3253_v43 }
 0x1ba   : > { %2330 = vst [vmem:[#allocation2] sm:$0xff] %v2329_v8  ;;  %2597 = vmatprep.subr.bf16.mxu1 (!%p2863_p10), %v3225_v20 }
 0x1bc   : > { %2567 = vmatpush1.bf16.msra.mxu0 %v3257_v46 }
 0x1bd   : > { %2598 = vmatpush1.bf16.msra.mxu1 %v3228_v22 }
 0x1be   : > { %2599 = vmatprep.subr.bf16.mxu1 %v3231_v25 }
 0x1c1   : > { %2600 = vmatpush1.bf16.msra.mxu1 %v3234_v28  ;;  %v2335_v42 = vld [vmem:[#allocation2] sm:$0xff] }
 0x1c2   : > { %2601 = vmatprep.subr.bf16.mxu1 %v3237_v30  ;;  %v2336_v45 = vmul.f32 0.00390625, %v2335_v42 }
 0x1c4   : > { %v2337_v48 = vpack.c.bf16 %v2336_v45, %v2336_v45 }
 0x1c5   : > { %2602 = vmatpush1.bf16.msra.mxu1 %v3240_v32 }
 0x1c6   : > { %2603 = vmatprep.subr.bf16.mxu1 %v3243_v34  ;;  %2585 = vmatmul.mubr.bf16.vlgmr.msra.gmra.mrb[0].mxu0 %v2337_v48 }
 0x1c9   : > { %2604 = vmatpush1.bf16.msra.mxu1 %v3246_v35 }
 0x1ca   : > { %2605 = vmatprep.subr.bf16.mxu1 %v3249_v37 }
 0x1cd   : > { %2606 = vmatpush1.bf16.msra.mxu1 %v3252_v41 }
 0x1ce   : > { %2607 = vmatprep.subr.bf16.mxu1 %v3255_v44 }
 0x1d1   : > { %2608 = vmatpush1.bf16.msra.mxu1 %v3258_v47 }
 0x1d4   : > { %2626 = vmatmul.mubr.bf16.vlgmr.msra.gmra.mrb[0].mxu1 %v2337_v48 }
 0x299   : > { %v2586_v56 = vpop.f32.mrb[0].mxu0 }
 0x29a   : > { %v2587_v59 = vadd.f32 %v2586_v56, %v2375_v54  ;;  %v2588_v60 = vpop.f32.mrb[1].mxu0 }
 0x29b   : > { %v2589_v62 = vadd.f32 %v2588_v60, %v2379_v55  ;;  %v2590_v63 = vpop.f32.mrb[2].mxu0 }
 0x29c   : > { %v2634_v1 = vmul.f32 %v2587_v59, %v2587_v59  ;;  %v2591_v2 = vpop.f32.mrb[3].mxu0 }
 0x29d   : > { %v2635_v6 = vmul.f32 %v2589_v62, %v2589_v62 }
 0x29f   : > { %v2638_v7 = vadd.f32 %v2635_v6, %v2634_v1 }
 0x2a7   : > { %v2627_v57 = vpop.f32.mrb[0].mxu1 }
 0x2a8   : > { %v2628_v39 = vadd.f32 %v2627_v57, %v2383_v24  ;;  %v2629_v61 = vpop.f32.mrb[1].mxu1 }
 0x2a9   : > { %v2631_v0 = vpop.f32.mrb[2].mxu1  ;;  %v2630_v15 = vadd.f32 %v2629_v61, %v2387_v58 }
 0x2aa   : > { %v2632_v4 = vpop.f32.mrb[3].mxu1  ;;  %v2636_v5 = vmul.f32 %v2628_v39, %v2628_v39 }
 0x2ab   : > { %v2637_v8 = vmul.f32 %v2630_v15, %v2630_v15 }
 0x2ac   : > { %v2639_v9 = vadd.f32 %v2638_v7, %v2636_v5 }
 0x2ae   : > { %v2640_v40 = vadd.f32 %v2639_v9, %v2637_v8 }
 0x2b0   : > { %2641 = vadd.xlane.f32.xlu0 %v2640_v40 }
 0x33d   : > { %v2642_v10 = vpop.xlane.xlu0 %2641 }
 0x33e   : > { %v2643_v11 = vadd.f32 1e-12, %v2642_v10 }
 0x340   : > { %3259 = vrsqrt.f32 %v2643_v11 }
 0x34a   : > { %v3260_v12 = vpop.eup %3259 }
 0x34b   : > { %v2645_v13 = vmul.f32 %v3260_v12, %v2587_v59  ;;  %v2646_v14 = vmul.f32 %v3260_v12, %v2589_v62  ;;  %v2647_v17 = vmul.f32 %v3260_v12, %v2628_v39  ;;  %v2648_v18 = vmul.f32 %v3260_v12, %v2630_v15 }
 0x34d   : > { %2649 = vst [vmem:[%s3936_s5] sm:$0xff] %v2645_v13  ;;  %2650 = vst [vmem:[%s3936_s5 + $0x8] sm:$0xff] %v2646_v14 }
 0x34e   : > { %2651 = vst [vmem:[%s3936_s5 + $0x10] sm:$0xff] %v2647_v17  ;;  %2652 = vst [vmem:[%s3936_s5 + $0x18] sm:$0xff] %v2648_v18 }
 0x34f PF: > { %s15_s22 = sadd.s32 1, %s3299_s22   ;;  %s3937_s18 = smov %s3287_s19 }
 0x350   : > { %p12_p11 = scmp.ge.s32.totalorder %s15_s22, 4   ;;  %s3938_s19 = smov %s3368_s26 }
 0x351   : > { %s3939_s20 = smov %s3295_s21  ;;  %s3940_s21 = smov %s3942_s23 }
 0x352   :  { %14 = sbr.rel (!%p12_p11) target bundleno = 3 (0x3), region = 124 }

</bundles_post_ra>
